<compile_context>
chip_gen: v6e
topology: v6e:2x2x1
jax: 0.10.0
libtpu: 0.0.40
codegen_flags: <defaults>
</compile_context>

<pallas_src>
import functools

import jax
import jax.numpy as jnp
from jax import lax
from jax.experimental import pallas as pl
from jax.experimental.pallas import tpu as pltpu


def _mha_kernel(x_ref, wqkv_ref, wp_ref, bp_ref, out_ref, maps_ref,
                *, num_heads, autoregression):
    B, T, C = x_ref.shape            # C == embed_dim
    H = num_heads
    D = C // H
    scale = 1.0 / (C ** 0.5)

    # One fused projection for q, k, v of every head: (B*T, C) @ (C, 3C).
    x2d = x_ref[...].reshape(B * T, C)                 # leading-dim merge (free)
    qkv = jnp.dot(x2d, wqkv_ref[...], preferred_element_type=jnp.float32)
    qkv = qkv.reshape(B, T, 3 * C)                     # leading-dim split (free)

    row = lax.broadcasted_iota(jnp.int32, (T, T), 0)   # key index i
    col = lax.broadcasted_iota(jnp.int32, (T, T), 1)   # query index j
    causal = col > row

    weights_all = []
    attn_all = []
    for h in range(H):                                 # H is a tiny static constant
        q = qkv[:, :, h * D:(h + 1) * D] * scale               # (B, T, D), pre-scaled
        k = qkv[:, :, C + h * D:C + (h + 1) * D]               # (B, T, D)
        v = qkv[:, :, 2 * C + h * D:2 * C + (h + 1) * D]       # (B, T, D)

        # logits[b, i, j] = k_i . q_j   (matches torch einsum 'btc,bTc->bTt')
        logits = jnp.einsum('bid,bjd->bij', k, q,
                            preferred_element_type=jnp.float32)   # (B, T, T)
        if autoregression:
            logits = jnp.where(causal, -jnp.inf, logits)

        m = jnp.max(logits, axis=-1, keepdims=True)    # (B, T, 1)
        e = jnp.exp(logits - m)
        inv_s = 1.0 / jnp.sum(e, axis=-1, keepdims=True)   # per-row reciprocal (exact)
        weights_all.append(e * inv_s)                  # (B, T, T)

        # torch einsum 'btt,btc->btc' == diag(weights) * v; diagonal in O(T*D).
        diag_logit = jnp.sum(q * k, axis=-1, keepdims=True)   # (B, T, 1), already scaled
        diag = jnp.exp(diag_logit - m) * inv_s
        attn_all.append(diag * v)                      # (B, T, D)

    # Single full-block store of every head's softmax map.
    maps_ref[...] = jnp.stack(weights_all, axis=0)     # (H, B, T, T)

    # Fused output projection over the concatenated heads: (B*T, C) @ (C, C) + bias.
    concat = jnp.concatenate(attn_all, axis=-1).reshape(B * T, C)
    y = jnp.dot(concat, wp_ref[...], preferred_element_type=jnp.float32) + bp_ref[...]
    out_ref[...] = y.reshape(B, T, C)


def multi_head_attention(x, wq, wk, wv, wp_t, bp, *, autoregression=True):
    """x: (B,T,E). wq/wk/wv: (H,E,D) (transposed torch Linear weights).
    wp_t: (E,E) = proj.weight^T.  bp: (E,) proj bias.
    Returns (y[B,T,E], attention_maps[H,B,T,T])."""
    B, T, C = x.shape
    H, _, D = wq.shape
    assert H * D == C

    # Pack all per-head projection weights into one lane-dense (C, 3C) slab:
    #   w_qkv[:,        h*D:(h+1)*D] = wq[h]
    #   w_qkv[:,  C  +  h*D:...]     = wk[h]
    #   w_qkv[:, 2C  +  h*D:...]     = wv[h]
    pack = lambda w: jnp.transpose(w, (1, 0, 2)).reshape(C, H * D)
    w_qkv = jnp.concatenate([pack(wq), pack(wk), pack(wv)], axis=1)   # (C, 3C)
    bp2 = bp.reshape(1, C)

    kernel = functools.partial(_mha_kernel, num_heads=H,
                               autoregression=autoregression)
    out, maps = pl.pallas_call(
        kernel,
        out_shape=(jax.ShapeDtypeStruct((B, T, C), jnp.float32),
                   jax.ShapeDtypeStruct((H, B, T, T), jnp.float32)),
        in_specs=[pl.BlockSpec(memory_space=pltpu.MemorySpace.VMEM)
                  for _ in range(4)],
        out_specs=(pl.BlockSpec(memory_space=pltpu.MemorySpace.VMEM),
                   pl.BlockSpec(memory_space=pltpu.MemorySpace.VMEM)),
        compiler_params=pltpu.CompilerParams(
            vmem_limit_bytes=32 * 1024 * 1024),
    )(x, w_qkv, wp_t, bp2)
    return out, maps


def _reference(x, wq, wk, wv, wp_t, bp, autoregression=True):
    """Pure-JAX mirror of the PyTorch forward (attention='basic')."""
    B, T, C = x.shape
    H, _, D = wq.shape
    tril = jnp.tril(jnp.ones((T, T), jnp.float32))
    outs, maps = [], []
    for h in range(H):
        q = x @ wq[h]
        k = x @ wk[h]
        v = x @ wv[h]
        logits = jnp.einsum('btc,bTc->bTt', q, k) / (C ** 0.5)
        if autoregression:
            logits = jnp.where(tril == 0, -jnp.inf, logits)
        weights = jax.nn.softmax(logits, axis=-1)
        diag = jnp.diagonal(weights, axis1=1, axis2=2)     # weights[b,t,t]
        attn = diag[:, :, None] * v                        # torch 'btt,btc->btc'
        outs.append(attn)
        maps.append(weights)
    concat = jnp.concatenate(outs, axis=-1)
    y = concat @ wp_t + bp
    return y, jnp.stack(maps, axis=0)


if __name__ == "__main__":
    # TODO(synk): dropout with p>0 in training mode not implemented (p=0.0 -> identity).
    # TODO(synk): only attention='basic' heads implemented ('alibi'/'bigbird' variants omitted).
    num_heads, embed_dim = 4, 32
    head_dim = embed_dim // num_heads
    B = 2
    blk = 32                     # block_size of this module instance; T must equal it

    keys = jax.random.split(jax.random.PRNGKey(0), 6)
    x = jax.random.normal(keys[0], (B, blk, embed_dim), jnp.float32)
    wq = jax.random.normal(keys[1], (num_heads, embed_dim, head_dim), jnp.float32) / jnp.sqrt(embed_dim)
    wk = jax.random.normal(keys[2], (num_heads, embed_dim, head_dim), jnp.float32) / jnp.sqrt(embed_dim)
    wv = jax.random.normal(keys[3], (num_heads, embed_dim, head_dim), jnp.float32) / jnp.sqrt(embed_dim)
    wp_t = jax.random.normal(keys[4], (embed_dim, embed_dim), jnp.float32) / jnp.sqrt(embed_dim)
    bp = jax.random.normal(keys[5], (embed_dim,), jnp.float32) * 0.1

    y, maps = multi_head_attention(x, wq, wk, wv, wp_t, bp, autoregression=True)
    y = jax.block_until_ready(y)
    maps = jax.block_until_ready(maps)

    y_expected, maps_expected = _reference(x, wq, wk, wv, wp_t, bp, autoregression=True)

    assert y.shape == (B, blk, embed_dim), y.shape
    assert maps.shape == (num_heads, B, blk, blk), maps.shape
    assert jnp.allclose(y, y_expected, rtol=1e-4, atol=1e-4), \
        float(jnp.max(jnp.abs(y - y_expected)))
    assert jnp.allclose(maps, maps_expected, rtol=1e-4, atol=1e-4), \
        float(jnp.max(jnp.abs(maps - maps_expected)))

    print("KERNEL_OK")
</pallas_src>

<mosaic_0001>
module attributes {stable_mosaic.version = 11 : i64} {
  func.func @_mha_kernel(%arg0: memref<2x32x32xf32, #tpu.memory_space<vmem>>, %arg1: memref<32x96xf32, #tpu.memory_space<vmem>>, %arg2: memref<32x32xf32, #tpu.memory_space<vmem>>, %arg3: memref<1x32xf32, #tpu.memory_space<vmem>>, %arg4: memref<2x32x32xf32, #tpu.memory_space<vmem>>, %arg5: memref<4x2x32x32xf32, #tpu.memory_space<vmem>>) attributes {dimension_semantics = [], scalar_prefetch = 0 : i64, scratch_operands = 0 : i64, tpu.core_type = #tpu.core_type<tc>} {
    %c0 = arith.constant 0 : index
    %c0_0 = arith.constant 0 : index
    %c0_1 = arith.constant 0 : index
    %0 = vector.load %arg0[%c0, %c0_0, %c0_1] : memref<2x32x32xf32, #tpu.memory_space<vmem>>, vector<2x32x32xf32>
    %1 = vector.shape_cast %0 : vector<2x32x32xf32> to vector<64x32xf32>
    %c0_2 = arith.constant 0 : index
    %c0_3 = arith.constant 0 : index
    %2 = vector.load %arg1[%c0_2, %c0_3] : memref<32x96xf32, #tpu.memory_space<vmem>>, vector<32x96xf32>
    %cst = arith.constant dense<0.000000e+00> : vector<64x96xf32>
    %3 = tpu.matmul %1, %2, %cst {dimension_numbers = #tpu.dot_dimension_numbers<[1], [0], [0], [1], [0, 0, 1, 1], [], []>} : vector<64x32xf32>, vector<32x96xf32>, vector<64x96xf32> -> vector<64x96xf32>
    %4 = vector.shape_cast %3 : vector<64x96xf32> to vector<2x32x96xf32>
    %5 = tpu.iota {dimensions = array<i32: 0>} : vector<32x32xi32>
    %6 = tpu.iota {dimensions = array<i32: 1>} : vector<32x32xi32>
    %7 = arith.cmpi sgt, %6, %5 : vector<32x32xi32>
    %8 = vector.extract_strided_slice %4 {offsets = [0, 0, 0], sizes = [2, 32, 8], strides = [1, 1, 1]} : vector<2x32x96xf32> to vector<2x32x8xf32>
    %cst_4 = arith.constant 0.176776692 : f32
    %9 = vector.broadcast %cst_4 : f32 to vector<2x32x8xf32>
    %10 = arith.mulf %8, %9 : vector<2x32x8xf32>
    %11 = vector.extract_strided_slice %4 {offsets = [0, 0, 32], sizes = [2, 32, 8], strides = [1, 1, 1]} : vector<2x32x96xf32> to vector<2x32x8xf32>
    %12 = vector.extract_strided_slice %4 {offsets = [0, 0, 64], sizes = [2, 32, 8], strides = [1, 1, 1]} : vector<2x32x96xf32> to vector<2x32x8xf32>
    "tpu.trace_start"() <{level = 10 : i32, message = "bid,bjd->bij"}> : () -> ()
    %cst_5 = arith.constant dense<0.000000e+00> : vector<2x32x32xf32>
    %13 = tpu.matmul %11, %10, %cst_5 {dimension_numbers = #tpu.dot_dimension_numbers<[2], [2], [1], [1], [0, 0, 0, 1, 1, 1], [0], [0]>} : vector<2x32x8xf32>, vector<2x32x8xf32>, vector<2x32x32xf32> -> vector<2x32x32xf32>
    %cst_6 = arith.constant 0xFF800000 : f32
    "tpu.trace_stop"() : () -> ()
    %14 = vector.shape_cast %7 : vector<32x32xi1> to vector<1x32x32xi1>
    %15 = vector.broadcast %14 : vector<1x32x32xi1> to vector<2x32x32xi1>
    %16 = vector.broadcast %cst_6 : f32 to vector<2x32x32xf32>
    %17 = arith.select %15, %16, %13 : vector<2x32x32xi1>, vector<2x32x32xf32>
    %cst_7 = arith.constant dense<0xFF800000> : vector<2x32xf32>
    %18 = vector.multi_reduction <maximumf>, %17, %cst_7 [2] : vector<2x32x32xf32> to vector<2x32xf32>
    %19 = vector.shape_cast %18 : vector<2x32xf32> to vector<2x32x1xf32>
    %20 = vector.broadcast %19 : vector<2x32x1xf32> to vector<2x32x32xf32>
    %21 = arith.subf %17, %20 : vector<2x32x32xf32>
    %22 = math.exp %21 : vector<2x32x32xf32>
    %cst_8 = arith.constant dense<0.000000e+00> : vector<2x32xf32>
    %23 = vector.multi_reduction <add>, %22, %cst_8 [2] : vector<2x32x32xf32> to vector<2x32xf32>
    %24 = vector.shape_cast %23 : vector<2x32xf32> to vector<2x32x1xf32>
    %cst_9 = arith.constant 1.000000e+00 : f32
    %25 = vector.broadcast %cst_9 : f32 to vector<2x32x1xf32>
    %26 = arith.divf %25, %24 : vector<2x32x1xf32>
    %27 = vector.broadcast %26 : vector<2x32x1xf32> to vector<2x32x32xf32>
    %28 = arith.mulf %22, %27 : vector<2x32x32xf32>
    %29 = arith.mulf %10, %11 : vector<2x32x8xf32>
    %cst_10 = arith.constant dense<0.000000e+00> : vector<2x32xf32>
    %30 = vector.multi_reduction <add>, %29, %cst_10 [2] : vector<2x32x8xf32> to vector<2x32xf32>
    %31 = vector.shape_cast %30 : vector<2x32xf32> to vector<2x32x1xf32>
    %32 = arith.subf %31, %19 : vector<2x32x1xf32>
    %33 = math.exp %32 : vector<2x32x1xf32>
    %34 = arith.mulf %33, %26 : vector<2x32x1xf32>
    %35 = vector.broadcast %34 : vector<2x32x1xf32> to vector<2x32x8xf32>
    %36 = arith.mulf %35, %12 : vector<2x32x8xf32>
    %37 = vector.extract_strided_slice %4 {offsets = [0, 0, 8], sizes = [2, 32, 8], strides = [1, 1, 1]} : vector<2x32x96xf32> to vector<2x32x8xf32>
    %cst_11 = arith.constant 0.176776692 : f32
    %38 = vector.broadcast %cst_11 : f32 to vector<2x32x8xf32>
    %39 = arith.mulf %37, %38 : vector<2x32x8xf32>
    %40 = vector.extract_strided_slice %4 {offsets = [0, 0, 40], sizes = [2, 32, 8], strides = [1, 1, 1]} : vector<2x32x96xf32> to vector<2x32x8xf32>
    %41 = vector.extract_strided_slice %4 {offsets = [0, 0, 72], sizes = [2, 32, 8], strides = [1, 1, 1]} : vector<2x32x96xf32> to vector<2x32x8xf32>
    "tpu.trace_start"() <{level = 10 : i32, message = "bid,bjd->bij"}> : () -> ()
    %cst_12 = arith.constant dense<0.000000e+00> : vector<2x32x32xf32>
    %42 = tpu.matmul %40, %39, %cst_12 {dimension_numbers = #tpu.dot_dimension_numbers<[2], [2], [1], [1], [0, 0, 0, 1, 1, 1], [0], [0]>} : vector<2x32x8xf32>, vector<2x32x8xf32>, vector<2x32x32xf32> -> vector<2x32x32xf32>
    %cst_13 = arith.constant 0xFF800000 : f32
    "tpu.trace_stop"() : () -> ()
    %43 = vector.shape_cast %7 : vector<32x32xi1> to vector<1x32x32xi1>
    %44 = vector.broadcast %43 : vector<1x32x32xi1> to vector<2x32x32xi1>
    %45 = vector.broadcast %cst_13 : f32 to vector<2x32x32xf32>
    %46 = arith.select %44, %45, %42 : vector<2x32x32xi1>, vector<2x32x32xf32>
    %cst_14 = arith.constant dense<0xFF800000> : vector<2x32xf32>
    %47 = vector.multi_reduction <maximumf>, %46, %cst_14 [2] : vector<2x32x32xf32> to vector<2x32xf32>
    %48 = vector.shape_cast %47 : vector<2x32xf32> to vector<2x32x1xf32>
    %49 = vector.broadcast %48 : vector<2x32x1xf32> to vector<2x32x32xf32>
    %50 = arith.subf %46, %49 : vector<2x32x32xf32>
    %51 = math.exp %50 : vector<2x32x32xf32>
    %cst_15 = arith.constant dense<0.000000e+00> : vector<2x32xf32>
    %52 = vector.multi_reduction <add>, %51, %cst_15 [2] : vector<2x32x32xf32> to vector<2x32xf32>
    %53 = vector.shape_cast %52 : vector<2x32xf32> to vector<2x32x1xf32>
    %cst_16 = arith.constant 1.000000e+00 : f32
    %54 = vector.broadcast %cst_16 : f32 to vector<2x32x1xf32>
    %55 = arith.divf %54, %53 : vector<2x32x1xf32>
    %56 = vector.broadcast %55 : vector<2x32x1xf32> to vector<2x32x32xf32>
    %57 = arith.mulf %51, %56 : vector<2x32x32xf32>
    %58 = arith.mulf %39, %40 : vector<2x32x8xf32>
    %cst_17 = arith.constant dense<0.000000e+00> : vector<2x32xf32>
    %59 = vector.multi_reduction <add>, %58, %cst_17 [2] : vector<2x32x8xf32> to vector<2x32xf32>
    %60 = vector.shape_cast %59 : vector<2x32xf32> to vector<2x32x1xf32>
    %61 = arith.subf %60, %48 : vector<2x32x1xf32>
    %62 = math.exp %61 : vector<2x32x1xf32>
    %63 = arith.mulf %62, %55 : vector<2x32x1xf32>
    %64 = vector.broadcast %63 : vector<2x32x1xf32> to vector<2x32x8xf32>
    %65 = arith.mulf %64, %41 : vector<2x32x8xf32>
    %66 = vector.extract_strided_slice %4 {offsets = [0, 0, 16], sizes = [2, 32, 8], strides = [1, 1, 1]} : vector<2x32x96xf32> to vector<2x32x8xf32>
    %cst_18 = arith.constant 0.176776692 : f32
    %67 = vector.broadcast %cst_18 : f32 to vector<2x32x8xf32>
    %68 = arith.mulf %66, %67 : vector<2x32x8xf32>
    %69 = vector.extract_strided_slice %4 {offsets = [0, 0, 48], sizes = [2, 32, 8], strides = [1, 1, 1]} : vector<2x32x96xf32> to vector<2x32x8xf32>
    %70 = vector.extract_strided_slice %4 {offsets = [0, 0, 80], sizes = [2, 32, 8], strides = [1, 1, 1]} : vector<2x32x96xf32> to vector<2x32x8xf32>
    "tpu.trace_start"() <{level = 10 : i32, message = "bid,bjd->bij"}> : () -> ()
    %cst_19 = arith.constant dense<0.000000e+00> : vector<2x32x32xf32>
    %71 = tpu.matmul %69, %68, %cst_19 {dimension_numbers = #tpu.dot_dimension_numbers<[2], [2], [1], [1], [0, 0, 0, 1, 1, 1], [0], [0]>} : vector<2x32x8xf32>, vector<2x32x8xf32>, vector<2x32x32xf32> -> vector<2x32x32xf32>
    %cst_20 = arith.constant 0xFF800000 : f32
    "tpu.trace_stop"() : () -> ()
    %72 = vector.shape_cast %7 : vector<32x32xi1> to vector<1x32x32xi1>
    %73 = vector.broadcast %72 : vector<1x32x32xi1> to vector<2x32x32xi1>
    %74 = vector.broadcast %cst_20 : f32 to vector<2x32x32xf32>
    %75 = arith.select %73, %74, %71 : vector<2x32x32xi1>, vector<2x32x32xf32>
    %cst_21 = arith.constant dense<0xFF800000> : vector<2x32xf32>
    %76 = vector.multi_reduction <maximumf>, %75, %cst_21 [2] : vector<2x32x32xf32> to vector<2x32xf32>
    %77 = vector.shape_cast %76 : vector<2x32xf32> to vector<2x32x1xf32>
    %78 = vector.broadcast %77 : vector<2x32x1xf32> to vector<2x32x32xf32>
    %79 = arith.subf %75, %78 : vector<2x32x32xf32>
    %80 = math.exp %79 : vector<2x32x32xf32>
    %cst_22 = arith.constant dense<0.000000e+00> : vector<2x32xf32>
    %81 = vector.multi_reduction <add>, %80, %cst_22 [2] : vector<2x32x32xf32> to vector<2x32xf32>
    %82 = vector.shape_cast %81 : vector<2x32xf32> to vector<2x32x1xf32>
    %cst_23 = arith.constant 1.000000e+00 : f32
    %83 = vector.broadcast %cst_23 : f32 to vector<2x32x1xf32>
    %84 = arith.divf %83, %82 : vector<2x32x1xf32>
    %85 = vector.broadcast %84 : vector<2x32x1xf32> to vector<2x32x32xf32>
    %86 = arith.mulf %80, %85 : vector<2x32x32xf32>
    %87 = arith.mulf %68, %69 : vector<2x32x8xf32>
    %cst_24 = arith.constant dense<0.000000e+00> : vector<2x32xf32>
    %88 = vector.multi_reduction <add>, %87, %cst_24 [2] : vector<2x32x8xf32> to vector<2x32xf32>
    %89 = vector.shape_cast %88 : vector<2x32xf32> to vector<2x32x1xf32>
    %90 = arith.subf %89, %77 : vector<2x32x1xf32>
    %91 = math.exp %90 : vector<2x32x1xf32>
    %92 = arith.mulf %91, %84 : vector<2x32x1xf32>
    %93 = vector.broadcast %92 : vector<2x32x1xf32> to vector<2x32x8xf32>
    %94 = arith.mulf %93, %70 : vector<2x32x8xf32>
    %95 = vector.extract_strided_slice %4 {offsets = [0, 0, 24], sizes = [2, 32, 8], strides = [1, 1, 1]} : vector<2x32x96xf32> to vector<2x32x8xf32>
    %cst_25 = arith.constant 0.176776692 : f32
    %96 = vector.broadcast %cst_25 : f32 to vector<2x32x8xf32>
    %97 = arith.mulf %95, %96 : vector<2x32x8xf32>
    %98 = vector.extract_strided_slice %4 {offsets = [0, 0, 56], sizes = [2, 32, 8], strides = [1, 1, 1]} : vector<2x32x96xf32> to vector<2x32x8xf32>
    %99 = vector.extract_strided_slice %4 {offsets = [0, 0, 88], sizes = [2, 32, 8], strides = [1, 1, 1]} : vector<2x32x96xf32> to vector<2x32x8xf32>
    "tpu.trace_start"() <{level = 10 : i32, message = "bid,bjd->bij"}> : () -> ()
    %cst_26 = arith.constant dense<0.000000e+00> : vector<2x32x32xf32>
    %100 = tpu.matmul %98, %97, %cst_26 {dimension_numbers = #tpu.dot_dimension_numbers<[2], [2], [1], [1], [0, 0, 0, 1, 1, 1], [0], [0]>} : vector<2x32x8xf32>, vector<2x32x8xf32>, vector<2x32x32xf32> -> vector<2x32x32xf32>
    %cst_27 = arith.constant 0xFF800000 : f32
    "tpu.trace_stop"() : () -> ()
    %101 = vector.shape_cast %7 : vector<32x32xi1> to vector<1x32x32xi1>
    %102 = vector.broadcast %101 : vector<1x32x32xi1> to vector<2x32x32xi1>
    %103 = vector.broadcast %cst_27 : f32 to vector<2x32x32xf32>
    %104 = arith.select %102, %103, %100 : vector<2x32x32xi1>, vector<2x32x32xf32>
    %cst_28 = arith.constant dense<0xFF800000> : vector<2x32xf32>
    %105 = vector.multi_reduction <maximumf>, %104, %cst_28 [2] : vector<2x32x32xf32> to vector<2x32xf32>
    %106 = vector.shape_cast %105 : vector<2x32xf32> to vector<2x32x1xf32>
    %107 = vector.broadcast %106 : vector<2x32x1xf32> to vector<2x32x32xf32>
    %108 = arith.subf %104, %107 : vector<2x32x32xf32>
    %109 = math.exp %108 : vector<2x32x32xf32>
    %cst_29 = arith.constant dense<0.000000e+00> : vector<2x32xf32>
    %110 = vector.multi_reduction <add>, %109, %cst_29 [2] : vector<2x32x32xf32> to vector<2x32xf32>
    %111 = vector.shape_cast %110 : vector<2x32xf32> to vector<2x32x1xf32>
    %cst_30 = arith.constant 1.000000e+00 : f32
    %112 = vector.broadcast %cst_30 : f32 to vector<2x32x1xf32>
    %113 = arith.divf %112, %111 : vector<2x32x1xf32>
    %114 = vector.broadcast %113 : vector<2x32x1xf32> to vector<2x32x32xf32>
    %115 = arith.mulf %109, %114 : vector<2x32x32xf32>
    %116 = arith.mulf %97, %98 : vector<2x32x8xf32>
    %cst_31 = arith.constant dense<0.000000e+00> : vector<2x32xf32>
    %117 = vector.multi_reduction <add>, %116, %cst_31 [2] : vector<2x32x8xf32> to vector<2x32xf32>
    %118 = vector.shape_cast %117 : vector<2x32xf32> to vector<2x32x1xf32>
    %119 = arith.subf %118, %106 : vector<2x32x1xf32>
    %120 = math.exp %119 : vector<2x32x1xf32>
    %121 = arith.mulf %120, %113 : vector<2x32x1xf32>
    %122 = vector.broadcast %121 : vector<2x32x1xf32> to vector<2x32x8xf32>
    %123 = arith.mulf %122, %99 : vector<2x32x8xf32>
    %124 = vector.shape_cast %28 : vector<2x32x32xf32> to vector<1x2x32x32xf32>
    %125 = vector.shape_cast %57 : vector<2x32x32xf32> to vector<1x2x32x32xf32>
    %126 = vector.shape_cast %86 : vector<2x32x32xf32> to vector<1x2x32x32xf32>
    %127 = vector.shape_cast %115 : vector<2x32x32xf32> to vector<1x2x32x32xf32>
    %128 = tpu.concatenate %124, %125, %126, %127 in 0 : vector<1x2x32x32xf32>, vector<1x2x32x32xf32>, vector<1x2x32x32xf32>, vector<1x2x32x32xf32> -> vector<4x2x32x32xf32>
    %c0_32 = arith.constant 0 : index
    %c0_33 = arith.constant 0 : index
    %c0_34 = arith.constant 0 : index
    %c0_35 = arith.constant 0 : index
    %129 = vector.load %arg5[%c0_32, %c0_33, %c0_34, %c0_35] : memref<4x2x32x32xf32, #tpu.memory_space<vmem>>, vector<4x2x32x32xf32>
    tpu.vector_store %arg5[%c0_32, %c0_33, %c0_34, %c0_35], %128 {strides = array<i32>} : memref<4x2x32x32xf32, #tpu.memory_space<vmem>>, vector<4x2x32x32xf32>,
    %130 = tpu.concatenate %36, %65, %94, %123 in 2 : vector<2x32x8xf32>, vector<2x32x8xf32>, vector<2x32x8xf32>, vector<2x32x8xf32> -> vector<2x32x32xf32>
    %131 = vector.shape_cast %130 : vector<2x32x32xf32> to vector<64x32xf32>
    %c0_36 = arith.constant 0 : index
    %c0_37 = arith.constant 0 : index
    %132 = vector.load %arg2[%c0_36, %c0_37] : memref<32x32xf32, #tpu.memory_space<vmem>>, vector<32x32xf32>
    %cst_38 = arith.constant dense<0.000000e+00> : vector<64x32xf32>
    %133 = tpu.matmul %131, %132, %cst_38 {dimension_numbers = #tpu.dot_dimension_numbers<[1], [0], [0], [1], [0, 0, 1, 1], [], []>} : vector<64x32xf32>, vector<32x32xf32>, vector<64x32xf32> -> vector<64x32xf32>
    %c0_39 = arith.constant 0 : index
    %c0_40 = arith.constant 0 : index
    %134 = vector.load %arg3[%c0_39, %c0_40] : memref<1x32xf32, #tpu.memory_space<vmem>>, vector<1x32xf32>
    %135 = vector.broadcast %134 : vector<1x32xf32> to vector<64x32xf32>
    %136 = arith.addf %133, %135 : vector<64x32xf32>
    %137 = vector.shape_cast %136 : vector<64x32xf32> to vector<2x32x32xf32>
    %c0_41 = arith.constant 0 : index
    %c0_42 = arith.constant 0 : index
    %c0_43 = arith.constant 0 : index
    %138 = vector.load %arg4[%c0_41, %c0_42, %c0_43] : memref<2x32x32xf32, #tpu.memory_space<vmem>>, vector<2x32x32xf32>
    tpu.vector_store %arg4[%c0_41, %c0_42, %c0_43], %137 {strides = array<i32>} : memref<2x32x32xf32, #tpu.memory_space<vmem>>, vector<2x32x32xf32>,
    return
  }
}

</mosaic_0001>

<bundles_post_ra>
// kernel: tpu_custom_call.1
= control target key start
LH: loop header
LB: loop body
LE: loop exit
PB: predicated region body
PF: predicated region fallthrough
CT: control target
= control target key end

     0   :  { %11 = vsyncpa [#allocation3], 0  ;;  %s4216_s0 = inlined_call_operand.hbm [shape: f32[2,32,32], index: 0, kind: input, shape index: {}]   ;;  %s4217_s1 = inlined_call_operand.hbm [shape: f32[32,96], index: 1, kind: input, shape index: {}]   ;;  %s4218_s2 = inlined_call_operand.hbm [shape: f32[32,32], index: 2, kind: input, shape index: {}]   ;;  %s4219_s3 = inlined_call_operand.vmem [shape: f32[1,32], index: 3, kind: input, shape index: {}]   ;;  %s4220_s4 = inlined_call_operand.hbm [shape: f32[2,32,32], index: 4, kind: output, shape index: {0}]   ;;  %s4221_s5 = inlined_call_operand.hbm [shape: f32[4,2,32,32], index: 5, kind: output, shape index: {1}]  }
   0x1   :  { %12 = vsyncpa [#allocation6], 0 }
   0x2   :  { %13 = vsyncpa [#allocation4], 0 }
   0x3   :  { %14 = vsyncpa [#allocation10], 0  ;;  %s2948_s18 = smov [#allocation5]   ;;  %s2949_s20 = smov [#allocation2]  }
   0x4   :  { %s32_s19 = sshll.u32 %s2948_s18, 4  ;;  %s20_s21 = sshll.u32 %s2949_s20, 4  ;;  %s33_s19 = int_to_ptr.vmem [resolvable:$true] %s32_s19  ;;  %s21_s21 = int_to_ptr.vmem [resolvable:$true] %s20_s21 }
   0x5   :  { %s2848_s22 = scalar_lea.vmem %s33_s19, 512  ;;  %p2853_p1 = scmp.lt.s32.totalorder %s33_s19, %s33_s19 }
   0x6   :  { %p2849_p0 = scmp.ne.s32.totalorder %s33_s19, %s2848_s22  ;;  %p2854_p2 = scmp.lt.s32.totalorder %s2848_s22, %s2848_s22 }
   0x8   :  { %p2855_p3 = por %p2854_p2, %p2853_p1 }
   0xa   :  { %p2856_p4 = pnand %p2855_p3, %p2849_p0 }
   0xc   :  { %2859 = shalt.err (!%p2856_p4)
}
   0xd   :  { %s2950_s23 = smov 128   ;;  %s2951_s24 = smov 8  }
   0xe   :  { %38 = dma.hbm_to_vmem [thread:$0]  %s4217_s1, 512, %s33_s19, [#allocation6], %s2950_s23, %s2950_s23, %s2951_s24  }
   0xf   :  { %s2868_s27 = scalar_lea.vmem %s21_s21, 1024  ;;  %p2873_p6 = scmp.lt.s32.totalorder %s21_s21, %s21_s21 }
  0x10   :  { %p2869_p5 = scmp.ne.s32.totalorder %s21_s21, %s2868_s27  ;;  %p2874_p7 = scmp.lt.s32.totalorder %s2868_s27, %s2868_s27 }
  0x12   :  { %p2875_p8 = por %p2874_p7, %p2873_p6 }
  0x14   :  { %p2876_p9 = pnand %p2875_p8, %p2869_p5 }
  0x16   :  { %2879 = shalt.err (!%p2876_p9)
}
  0x17   :  { %26 = dma.hbm_to_vmem [thread:$0]  %s4216_s0, 1024, %s21_s21, [#allocation3], %s2950_s23, %s2950_s23, %s2951_s24  }
  0x18   :  { %s2952_s30 = smov [#allocation7]  }
  0x19   :  { %s44_s6 = sshll.u32 %s2952_s30, 4  ;;  %s45_s6 = int_to_ptr.vmem [resolvable:$true] %s44_s6 }
  0x1a   :  { %s2888_s7 = scalar_lea.vmem %s45_s6, 512  ;;  %p2893_p11 = scmp.lt.s32.totalorder %s45_s6, %s45_s6 }
  0x1b   :  { %p2889_p10 = scmp.ne.s32.totalorder %s45_s6, %s2888_s7  ;;  %p2894_p12 = scmp.lt.s32.totalorder %s2888_s7, %s2888_s7 }
  0x1d   :  { %p2895_p13 = por %p2894_p12, %p2893_p11 }
  0x1f   :  { %p2896_p0 = pnand %p2895_p13, %p2889_p10 }
  0x21   :  { %2899 = shalt.err (!%p2896_p0)
}
  0x22   :  { %50 = dma.hbm_to_vmem [thread:$0]  %s4218_s2, 512, %s45_s6, [#allocation6], %s2950_s23, %s2950_s23, %s2951_s24  }
  0x23   :  { %2940 = dma.done.wait [#allocation3], 1024  }
  0x24   :  { %2941 = vsyncadd [#allocation3], 4294966272 }
  0x25   :  { %2942 = dma.done.wait [#allocation6], 1024  }
  0x26   :  { %2943 = vsyncadd [#allocation6], 4294966272  ;;  %vm74_vm0 = vcmask 261120   ;;  %v73_v0 = vld [vmem:[#allocation5 + $0x18] sm:$0xff]  ;;  %v72_v1 = vld [vmem:[#allocation5 + $0x10] sm:$0xff]  ;;  %s2953_s0 = smov 96  }
  0x27   :  { %2473 = vmatprep.subr.mxu0 %v73_v0  ;;  %v62_v2 = vld [vmem:[#allocation2] sm:$0xff]  ;;  %v71_v3 = vld [vmem:[#allocation5 + $0x8] sm:$0xff]  ;;  %v64_v6 = vld [vmem:[#allocation2 + $0x10] sm:$0xff]  ;;  %vm235_vm1 = vcmask 64512   ;;  %s2954_s2 = smov 88   ;;  %s2955_s9 = smov 80  }
  0x28   :  { %2474 = vmatpush3.msra.mxu0 %v73_v0  ;;  %2481 = vmatprep.mubr.msk.f32.mxu0 %vm74_vm0, %v62_v2  ;;  %v70_v4 = vld [vmem:[#allocation5] sm:$0xff]  ;;  %v63_v5 = vld [vmem:[#allocation2 + $0x8] sm:$0xff]  ;;  %v65_v7 = vld [vmem:[#allocation2 + $0x18] sm:$0xff]  ;;  %s2956_s10 = smov 120   ;;  %s2957_s11 = smov 112   ;;  %vm2104_vm6 = vcmask 130048  }
  0x29   :  { %2475 = vmatprep.subr.mxu0 %v72_v1  ;;  %v66_v8 = vld [vmem:[#allocation2 + $0x20] sm:$0xff]  ;;  %v67_v9 = vld [vmem:[#allocation2 + $0x28] sm:$0xff]  ;;  %v68_v10 = vld [vmem:[#allocation2 + $0x30] sm:$0xff]  ;;  %s2958_s12 = smov 104   ;;  %s2959_s13 = smov 72   ;;  %vm2113_vm7 = vcmask 195584  }
  0x2a   :  { %2476 = vmatpush3.msra.mxu0 %v72_v1  ;;  %v69_v11 = vld [vmem:[#allocation2 + $0x38] sm:$0xff]  ;;  %s2960_s14 = smov 64   ;;  %s2961_s15 = smov [#allocation9]  }
  0x2b   :  { %2477 = vmatprep.subr.mxu0 %v71_v3  ;;  %s2287_s16 = sshll.u32 %s2961_s15, 4  ;;  %s2288_s16 = int_to_ptr.vmem [resolvable:$true] %s2287_s16 }
  0x2c   :  { %2478 = vmatpush3.msra.mxu0 %v71_v3  ;;  %s2900_s17 = scalar_lea.vmem %s2288_s16, 4096  ;;  %p2905_p2 = scmp.lt.s32.totalorder %s2288_s16, %s2288_s16 }
  0x2d   :  { %2479 = vmatprep.subr.mxu0 %v70_v4  ;;  %p2901_p1 = scmp.ne.s32.totalorder %s2288_s16, %s2900_s17  ;;  %p2906_p3 = scmp.lt.s32.totalorder %s2900_s17, %s2900_s17 }
  0x2e   :  { %2480 = vmatpush3.msra.mxu0 %v70_v4 }
  0x2f   :  { %2482 = vmatmul.mubr.msk.f32.vlgmr.msra.gmra.mxu0 %vm74_vm0, %v63_v5  ;;  %p2907_p4 = por %p2906_p3, %p2905_p2 }
  0x30   :  { %2484 = vmatprep.mubr.msk.f32.mxu0 %vm74_vm0, %v64_v6 }
  0x31   :  { %p2908_p5 = pnand %p2907_p4, %p2901_p1 }
  0x33   :  { %2485 = vmatmul.mubr.msk.f32.gmra.mxu0 %vm74_vm0, %v65_v7 }
  0x34   :  { %2487 = vmatprep.mubr.msk.f32.mxu0 %vm74_vm0, %v66_v8 }
  0x37   :  { %2488 = vmatmul.mubr.msk.f32.gmra.mxu0 %vm74_vm0, %v67_v9 }
  0x38   :  { %2490 = vmatprep.mubr.msk.f32.mxu0 %vm74_vm0, %v68_v10 }
  0x3b   :  { %2491 = vmatmul.mubr.msk.f32.gmra.mxu0 %vm74_vm0, %v69_v11 }
  0xef   :  { %v3019_v12 = vpop.f32.mrf.mxu0 }
  0xf0   :  { %229 = vrot.lane.b32.xlu1 %v3019_v12, %s2953_s0  ;;  %v3056_v20 = vmul.f32 0.17677669, %v3019_v12 }
  0xf1   :  { %v3023_v13 = vpop.f32.mrf.mxu0 }
  0xf2   :  { %227 = vrot.lane.b32.xlu0 %v3023_v13, %s2953_s0  ;;  %v3074_v24 = vmul.f32 0.17677669, %v3023_v13 }
  0xf3   :  { %v3027_v14 = vpop.f32.mrf.mxu0 }
  0xf4   :  { %652 = vrot.lane.b32.xlu1 %v3019_v12, %s2954_s2  ;;  %v3032_v15 = vmul.f32 0.17677669, %v3027_v14 }
  0xf5   :  { %v3034_v16 = vpop.f32.mrf.mxu0 }
  0xf6   :  { %4268 = vst [vmem:[#allocation15_spill] sm:$0xff] %v3034_v16  ;;  %650 = vrot.lane.b32.xlu0 %v3023_v13, %s2954_s2  ;;  %2493 = vmatprep.subr.msk.mxu1 %vm235_vm1, %v3032_v15  ;;  %v3041_v17 = vmul.f32 0.17677669, %v3034_v16 }
  0xf7   :  { %2494 = vmatpush3.xpose.msk.msra.mxu1 %vm235_vm1, %v3032_v15  ;;  %v3045_v18 = vpop.f32.mrf.mxu0 }
  0xf8   :  { %4269 = vst [vmem:[#allocation16_spill] sm:$0xff] %v3045_v18  ;;  %1086 = vrot.lane.b32.xlu1 %v3019_v12, %s2955_s9  ;;  %2495 = vmatprep.subr.msk.mxu1 %vm235_vm1, %v3041_v17  ;;  %v3090_v26 = vmul.f32 0.17677669, %v3045_v18 }
  0xf9   :  { %v3051_v19 = vpop.f32.mrf.mxu0 }
  0xfa   :  { %4270 = vst [vmem:[#allocation17_spill] sm:$0xff] %v3051_v19  ;;  %1084 = vrot.lane.b32.xlu0 %v3023_v13, %s2955_s9  ;;  %v3105_v27 = vmul.f32 0.17677669, %v3051_v19 }
  0xfb   :  { %2496 = vmatpush3.xpose.msk.msra.mxu1 %vm235_vm1, %v3041_v17  ;;  %v3060_v21 = vpop.f32.mrf.mxu0 }
  0xfc   :  { %4271 = vst [vmem:[#allocation18_spill] sm:$0xff] %v3060_v21  ;;  %660 = vrot.lane.b32.xlu1 %v3056_v20, %s2956_s10  ;;  %2497 = vmatprep.subr.msk.mxu1 %vm235_vm1, %v3056_v20  ;;  %v3067_v22 = vmul.f32 0.17677669, %v3060_v21 }
  0xfd   :  { %v3069_v23 = vpop.f32.mrf.mxu0 }
  0xfe   :  { %4272 = vst [vmem:[#allocation19_spill] sm:$0xff] %v3069_v23  ;;  %664 = vrot.lane.b32.xlu0 %v3032_v15, %s2956_s10  ;;  %2507 = vmatprep.subr.msk.mxu0 %vm235_vm1, %v3067_v22  ;;  %v3079_v25 = vmul.f32 0.17677669, %v3069_v23 }
  0xff   :  { %2498 = vmatpush3.xpose.msk.msra.mxu1 %vm235_vm1, %v3056_v20  ;;  %2508 = vmatpush3.xpose.msk.msra.mxu0 %vm235_vm1, %v3067_v22 }
 0x100   :  { %1094 = vrot.lane.b32.xlu1 %v3056_v20, %s2957_s11  ;;  %2499 = vmatprep.subr.msk.mxu1 %vm235_vm1, %v3074_v24 }
 0x101   :  { %2509 = vmatprep.subr.msk.mxu0 %vm235_vm1, %v3079_v25 }
 0x102   :  { %231 = vrot.lane.b32.xlu0 %v3034_v16, %s2953_s0 }
 0x103   :  { %2500 = vmatpush3.xpose.msk.msra.mxu1 %vm235_vm1, %v3074_v24  ;;  %2510 = vmatpush3.xpose.msk.msra.mxu0 %vm235_vm1, %v3079_v25 }
 0x104   :  { %658 = vrot.lane.b32.xlu1 %v3074_v24, %s2956_s10  ;;  %2511 = vmatprep.subr.msk.mxu0 %vm235_vm1, %v3090_v26 }
 0x106   :  { %1098 = vrot.lane.b32.xlu0 %v3032_v15, %s2957_s11 }
 0x107   :  { %2512 = vmatpush3.xpose.msk.msra.mxu0 %vm235_vm1, %v3090_v26 }
 0x108   :  { %233 = vrot.lane.b32.xlu1 %v3027_v14, %s2953_s0  ;;  %2513 = vmatprep.subr.msk.mxu0 %vm235_vm1, %v3105_v27 }
 0x10a   :  { %654 = vrot.lane.b32.xlu0 %v3034_v16, %s2954_s2 }
 0x10b   :  { %2514 = vmatpush3.xpose.msk.msra.mxu0 %vm235_vm1, %v3105_v27 }
 0x10c   :  { %1092 = vrot.lane.b32.xlu1 %v3074_v24, %s2957_s11 }
 0x10e   :  { %1524 = vrot.lane.b32.xlu0 %v3032_v15, %s2958_s12 }
 0x110   :  { %656 = vrot.lane.b32.xlu1 %v3027_v14, %s2954_s2 }
 0x112   :  { %1096 = vrot.lane.b32.xlu0 %v3041_v17, %s2957_s11 }
 0x114   :  { %662 = vrot.lane.b32.xlu1 %v3041_v17, %s2956_s10 }
 0x116   :  { %1522 = vrot.lane.b32.xlu0 %v3041_v17, %s2958_s12 }
 0x118   :  { %347 = vrot.lane.b32.xlu1 %v3045_v18, %s2953_s0 }
 0x11a   :  { %345 = vrot.lane.b32.xlu0 %v3051_v19, %s2953_s0 }
 0x11c   :  { %769 = vrot.lane.b32.xlu1 %v3045_v18, %s2954_s2 }
 0x11e   :  { %767 = vrot.lane.b32.xlu0 %v3051_v19, %s2954_s2 }
 0x120   :  { %777 = vrot.lane.b32.xlu1 %v3090_v26, %s2956_s10 }
 0x122   :  { %781 = vrot.lane.b32.xlu0 %v3067_v22, %s2956_s10 }
 0x124   :  { %1211 = vrot.lane.b32.xlu1 %v3090_v26, %s2957_s11 }
 0x126   :  { %349 = vrot.lane.b32.xlu0 %v3069_v23, %s2953_s0 }
 0x128   :  { %775 = vrot.lane.b32.xlu1 %v3105_v27, %s2956_s10 }
 0x12a   :  { %1215 = vrot.lane.b32.xlu0 %v3067_v22, %s2957_s11 }
 0x12c   :  { %351 = vrot.lane.b32.xlu1 %v3060_v21, %s2953_s0 }
 0x12e   :  { %771 = vrot.lane.b32.xlu0 %v3069_v23, %s2954_s2 }
 0x130   :  { %1209 = vrot.lane.b32.xlu1 %v3105_v27, %s2957_s11 }
 0x132   :  { %779 = vrot.lane.b32.xlu0 %v3079_v25, %s2956_s10 }
 0x134   :  { %773 = vrot.lane.b32.xlu1 %v3060_v21, %s2954_s2 }
 0x136   :  { %1201 = vrot.lane.b32.xlu0 %v3051_v19, %s2955_s9 }
 0x138   :  { %1520 = vrot.lane.b32.xlu1 %v3056_v20, %s2958_s12 }
 0x13a   :  { %1641 = vrot.lane.b32.xlu0 %v3067_v22, %s2958_s12 }
 0x13c   :  { %1203 = vrot.lane.b32.xlu1 %v3045_v18, %s2955_s9 }
 0x13e   :  { %1088 = vrot.lane.b32.xlu0 %v3034_v16, %s2955_s9 }
 0x140   :  { %1090 = vrot.lane.b32.xlu1 %v3027_v14, %s2955_s9 }
 0x142   :  { %1213 = vrot.lane.b32.xlu0 %v3079_v25, %s2957_s11 }
 0x144   :  { %1512 = vrot.lane.b32.xlu1 %v3019_v12, %s2959_s13 }
 0x146   :  { %1518 = vrot.lane.b32.xlu0 %v3074_v24, %s2958_s12 }
 0x148   :  { %1205 = vrot.lane.b32.xlu1 %v3069_v23, %s2955_s9 }
 0x14a   :  { %1510 = vrot.lane.b32.xlu0 %v3023_v13, %s2959_s13 }
 0x14c   :  { %1639 = vrot.lane.b32.xlu1 %v3079_v25, %s2958_s12 }
 0x14e   :  { %1637 = vrot.lane.b32.xlu0 %v3090_v26, %s2958_s12 }
 0x150   :  { %1207 = vrot.lane.b32.xlu1 %v3060_v21, %s2955_s9 }
 0x152   :  { %1514 = vrot.lane.b32.xlu0 %v3034_v16, %s2959_s13 }
 0x154   :  { %1635 = vrot.lane.b32.xlu1 %v3105_v27, %s2958_s12 }
 0x156   :  { %1516 = vrot.lane.b32.xlu0 %v3027_v14, %s2959_s13 }
 0x158   :  { %1629 = vrot.lane.b32.xlu1 %v3045_v18, %s2959_s13 }
 0x15a   :  { %1627 = vrot.lane.b32.xlu0 %v3051_v19, %s2959_s13 }
 0x15c   :  { %1633 = vrot.lane.b32.xlu1 %v3060_v21, %s2959_s13 }
 0x15e   :  { %1631 = vrot.lane.b32.xlu0 %v3069_v23, %s2959_s13 }
 0x162   :  { %v230_v28 = vpop.permute.xlu1 %229 }
 0x163   :  { %v3196_v29 = vmul.f32 %v230_v28, %v3056_v20 }
 0x164   :  { %v228_v30 = vpop.permute.xlu0 %227 }
 0x165   :  { %2501 = vmatprep.mubr.msk.f32.mxu1 %vm235_vm1, %v228_v30  ;;  %998 = vrot.lane.b32.xlu0 %v3196_v29, %s2956_s10  ;;  %v3209_v36 = vmul.f32 %v228_v30, %v3074_v24 }
 0x166   :  { %v653_v31 = vpop.permute.xlu1 %652  ;;  %2502 = vmatmul.mubr.msk.f32.vlgmr.msra.gmra.mxu1 %vm235_vm1, %v230_v28 }
 0x168   :  { %v651_v32 = vpop.permute.xlu0 %650 }
 0x169   :  { %1424 = vrot.lane.b32.xlu0 %v3196_v29, %s2957_s11 }
 0x16a   :  { %v3204_v33 = vpop.permute.xlu1 %1086 }
 0x16c   :  { %v1085_v34 = vpop.permute.xlu0 %1084 }
 0x16d   :  { %1850 = vrot.lane.b32.xlu0 %v3196_v29, %s2958_s12 }
 0x16e   :  { %v661_v35 = vpop.permute.xlu1 %660 }
 0x170   :  { %v665_v37 = vpop.permute.xlu0 %664 }
 0x171   :  { %996 = vrot.lane.b32.xlu0 %v3209_v36, %s2956_s10  ;;  %2521 = vmatprep.subr.msk.mxu1 %vm235_vm1, %v665_v37 }
 0x172   :  { %v1095_v38 = vpop.permute.xlu1 %1094  ;;  %2522 = vmatpush3.xpose.msk.msra.mxu1 %vm235_vm1, %v665_v37 }
 0x174   :  { %v232_v39 = vpop.permute.xlu0 %231 }
 0x175   :  { %2504 = vmatprep.mubr.msk.f32.mxu1 %vm235_vm1, %v232_v39  ;;  %1422 = vrot.lane.b32.xlu0 %v3209_v36, %s2957_s11  ;;  %v3227_v48 = vmul.f32 %v232_v39, %v3041_v17 }
 0x176   :  { %v659_v40 = vpop.permute.xlu1 %658 }
 0x178   :  { %v1099_v41 = vpop.permute.xlu0 %1098 }
 0x179   :  { %1848 = vrot.lane.b32.xlu0 %v3209_v36, %s2958_s12 }
 0x17a   :  { %v234_v42 = vpop.permute.xlu1 %233 }
 0x17b   :  { %v581_v43 = vmul.f32 %v234_v42, %v3032_v15  ;;  %2505 = vmatmul.mubr.msk.f32.gmra.mxu1 %vm235_vm1, %v234_v42 }
 0x17c   :  { %v655_v44 = vpop.permute.xlu0 %654  ;;  %2529 = vmatprep.mubr.msk.f32.mxu1 %vm235_vm1, %v651_v32 }
 0x17d   :  { %1428 = vrot.lane.b32.xlu1 %v581_v43, %s2957_s11  ;;  %1002 = vrot.lane.b32.xlu0 %v581_v43, %s2956_s10  ;;  %v595_v62 = vsel %vm235_vm1, %v581_v43, 0.0 }
 0x17e   :  { %v1093_v45 = vpop.permute.xlu1 %1092 }
 0x180   :  { %v1525_v46 = vpop.permute.xlu0 %1524 }
 0x181   :  { %1854 = vrot.lane.b32.xlu1 %v581_v43, %s2958_s12 }
 0x182   :  { %v657_v47 = vpop.permute.xlu1 %656 }
 0x184   :  { %v1097_v49 = vpop.permute.xlu0 %1096 }
 0x185   :  { %1000 = vrot.lane.b32.xlu1 %v3227_v48, %s2956_s10 }
 0x186   :  { %v663_v50 = vpop.permute.xlu1 %662 }
 0x187   :  { %2523 = vmatprep.subr.msk.mxu1 %vm235_vm1, %v663_v50 }
 0x188   :  { %v1523_v51 = vpop.permute.xlu0 %1522  ;;  %2524 = vmatpush3.xpose.msk.msra.mxu1 %vm235_vm1, %v663_v50 }
 0x189   :  { %2525 = vmatprep.subr.msk.mxu1 %vm235_vm1, %v661_v35  ;;  %1426 = vrot.lane.b32.xlu1 %v3227_v48, %s2957_s11 }
 0x18a   :  { %v348_v52 = vpop.permute.xlu1 %347 }
 0x18b   :  { %v3237_v53 = vmul.f32 %v348_v52, %v3090_v26 }
 0x18c   :  { %2526 = vmatpush3.xpose.msk.msra.mxu1 %vm235_vm1, %v661_v35  ;;  %v3240_v54 = vpop.permute.xlu0 %345 }
 0x18d   :  { %2515 = vmatprep.mubr.msk.f32.mxu0 %vm235_vm1, %v3240_v54  ;;  %2527 = vmatprep.subr.msk.mxu1 %vm235_vm1, %v659_v40  ;;  %v601_v39 = vsel %vm235_vm1, %v3237_v53, 0.0 }
 0x18e   :  { %1006 = vrot.lane.b32.xlu1 %v3237_v53, %s2956_s10  ;;  %v3247_v55 = vpop.permute.xlu1 %769  ;;  %2516 = vmatmul.mubr.msk.f32.vlgmr.msra.gmra.mxu0 %vm235_vm1, %v348_v52 }
 0x190   :  { %2528 = vmatpush3.xpose.msk.msra.mxu1 %vm235_vm1, %v659_v40  ;;  %v768_v56 = vpop.permute.xlu0 %767 }
 0x191   :  { %2549 = vmatprep.subr.msk.mxu1 %vm235_vm1, %v1099_v41 }
 0x192   :  { %1432 = vrot.lane.b32.xlu1 %v3237_v53, %s2957_s11  ;;  %v778_v57 = vpop.permute.xlu1 %777 }
 0x193   :  { %2530 = vmatmul.mubr.msk.f32.vlgmr.msra.gmra.mxu1 %vm235_vm1, %v653_v31 }
 0x194   :  { %2532 = vmatprep.mubr.msk.f32.mxu1 %vm235_vm1, %v655_v44  ;;  %2550 = vmatpush3.xpose.msk.msra.mxu1 %vm235_vm1, %v1099_v41  ;;  %v782_v58 = vpop.permute.xlu0 %781  ;;  %v582_v41 = vmul.f32 %v3240_v54, %v3105_v27 }
 0x195   :  { %2551 = vmatprep.subr.msk.mxu1 %vm235_vm1, %v1097_v49  ;;  %2535 = vmatprep.subr.msk.mxu0 %vm235_vm1, %v782_v58 }
 0x196   :  { %1858 = vrot.lane.b32.xlu1 %v3237_v53, %s2958_s12  ;;  %v3261_v59 = vpop.permute.xlu1 %1211  ;;  %2536 = vmatpush3.xpose.msk.msra.mxu0 %vm235_vm1, %v782_v58  ;;  %v598_v53 = vsel %vm235_vm1, %v582_v41, 0.0 }
 0x197   :  { %2533 = vmatmul.mubr.msk.f32.gmra.mxu1 %vm235_vm1, %v657_v47 }
 0x198   :  { %2552 = vmatpush3.xpose.msk.msra.mxu1 %vm235_vm1, %v1097_v49  ;;  %2557 = vmatprep.mubr.msk.f32.mxu1 %vm235_vm1, %v1085_v34  ;;  %v350_v60 = vpop.permute.xlu0 %349 }
 0x199   :  { %2518 = vmatprep.mubr.msk.f32.mxu0 %vm235_vm1, %v350_v60  ;;  %2553 = vmatprep.subr.msk.mxu1 %vm235_vm1, %v1095_v38  ;;  %v3294_v8 = vmul.f32 %v350_v60, %v3079_v25 }
 0x19a   :  { %v776_v61 = vpop.permute.xlu1 %775 }
 0x19c   :  { %2554 = vmatpush3.xpose.msk.msra.mxu1 %vm235_vm1, %v1095_v38  ;;  %v1216_v63 = vpop.permute.xlu0 %1215  ;;  %596 = vadd.xlane.f32.xlu0 %v595_v62  ;;  %v592_v38 = vsel %vm235_vm1, %v3227_v48, 0.0 }
 0x19d   :  { %2555 = vmatprep.subr.msk.mxu1 %vm235_vm1, %v1093_v45 }
 0x19e   :  { %v352_v0 = vpop.permute.xlu1 %351 }
 0x19f   :  { %v3273_v1 = vmul.f32 %v352_v0, %v3067_v22  ;;  %2519 = vmatmul.mubr.msk.f32.gmra.mxu0 %vm235_vm1, %v352_v0 }
 0x1a0   :  { %2556 = vmatpush3.xpose.msk.msra.mxu1 %vm235_vm1, %v1093_v45  ;;  %v772_v2 = vpop.permute.xlu0 %771  ;;  %2543 = vmatprep.mubr.msk.f32.mxu0 %vm235_vm1, %v768_v56 }
 0x1a1   :  { %2577 = vmatprep.subr.msk.mxu1 %vm235_vm1, %v1525_v46  ;;  %1010 = vrot.lane.b32.xlu1 %v3273_v1, %s2956_s10 }
 0x1a2   :  { %v1210_v3 = vpop.permute.xlu1 %1209 }
 0x1a3   :  { %2558 = vmatmul.mubr.msk.f32.vlgmr.msra.gmra.mxu1 %vm235_vm1, %v3204_v33 }
 0x1a4   :  { %2578 = vmatpush3.xpose.msk.msra.mxu1 %vm235_vm1, %v1525_v46  ;;  %v780_v4 = vpop.permute.xlu0 %779 }
 0x1a5   :  { %2579 = vmatprep.subr.msk.mxu1 %vm235_vm1, %v1523_v51  ;;  %1436 = vrot.lane.b32.xlu1 %v3273_v1, %s2957_s11 }
 0x1a6   :  { %2537 = vmatprep.subr.msk.mxu0 %vm235_vm1, %v780_v4  ;;  %v774_v5 = vpop.permute.xlu1 %773 }
 0x1a7   :  { %2538 = vmatpush3.xpose.msk.msra.mxu0 %vm235_vm1, %v780_v4 }
 0x1a8   :  { %2539 = vmatprep.subr.msk.mxu0 %vm235_vm1, %v778_v57  ;;  %2580 = vmatpush3.xpose.msk.msra.mxu1 %vm235_vm1, %v1523_v51  ;;  %v1202_v6 = vpop.permute.xlu0 %1201 }
 0x1a9   :  { %1862 = vrot.lane.b32.xlu1 %v3273_v1, %s2958_s12 }
 0x1aa   :  { %v1521_v7 = vpop.permute.xlu1 %1520 }
 0x1ab   :  { %2540 = vmatpush3.xpose.msk.msra.mxu0 %vm235_vm1, %v778_v57  ;;  %2581 = vmatprep.subr.msk.mxu1 %vm235_vm1, %v1521_v7  ;;  %v204_v57 = vlaneseq }
 0x1ac   :  { %2541 = vmatprep.subr.msk.mxu0 %vm235_vm1, %v776_v61  ;;  %2582 = vmatpush3.xpose.msk.msra.mxu1 %vm235_vm1, %v1521_v7  ;;  %v1642_v9 = vpop.permute.xlu0 %1641 }
 0x1ad   :  { %1008 = vrot.lane.b32.xlu1 %v3294_v8, %s2956_s10  ;;  %v205_v60 = vshrl.u32 %v204_v57, 7 }
 0x1ae   :  { %v1204_v10 = vpop.permute.xlu1 %1203 }
 0x1af   :  { %2542 = vmatpush3.xpose.msk.msra.mxu0 %vm235_vm1, %v776_v61  ;;  %v206_v62 = vadd.s32 8, %v205_v60 }
 0x1b0   :  { %2563 = vmatprep.subr.msk.mxu0 %vm235_vm1, %v1216_v63  ;;  %v1089_v11 = vpop.permute.xlu0 %1088 }
 0x1b1   :  { %2560 = vmatprep.mubr.msk.f32.mxu1 %vm235_vm1, %v1089_v11  ;;  %1434 = vrot.lane.b32.xlu1 %v3294_v8, %s2957_s11 }
 0x1b2   :  { %2544 = vmatmul.mubr.msk.f32.vlgmr.msra.gmra.mxu0 %vm235_vm1, %v3247_v55  ;;  %v1091_v15 = vpop.permute.xlu1 %1090  ;;  %1852 = vrot.lane.b32.xlu0 %v3227_v48, %s2958_s12 }
 0x1b3   :  { %2546 = vmatprep.mubr.msk.f32.mxu0 %vm235_vm1, %v772_v2  ;;  %2564 = vmatpush3.xpose.msk.msra.mxu0 %vm235_vm1, %v1216_v63  ;;  %v210_v63 = vand.u32 127, %v204_v57  ;;  %v607_v2 = vsel %vm235_vm1, %v3273_v1, 0.0 }
 0x1b4   :  { %2561 = vmatmul.mubr.msk.f32.gmra.mxu1 %vm235_vm1, %v1091_v15  ;;  %v1214_v17 = vpop.permute.xlu0 %1213 }
 0x1b5   :  { %1860 = vrot.lane.b32.xlu1 %v3294_v8, %s2958_s12  ;;  %2565 = vmatprep.subr.msk.mxu0 %vm235_vm1, %v1214_v17  ;;  %vm3377_vm2 = vcmp.gt.s32.totalorder %v210_v63, %v206_v62  ;;  %vm3402_vm4 = vcmp.gt.s32.totalorder %v210_v63, %v205_v60 }
 0x1b6   :  { %2547 = vmatmul.mubr.msk.f32.gmra.mxu0 %vm235_vm1, %v774_v5  ;;  %v1513_v20 = vpop.permute.xlu1 %1512 }
 0x1b7   :  { %2566 = vmatpush3.xpose.msk.msra.mxu0 %vm235_vm1, %v1214_v17  ;;  %2571 = vmatprep.mubr.msk.f32.mxu0 %vm235_vm1, %v1202_v6 }
 0x1b8   :  { %2567 = vmatprep.subr.msk.mxu0 %vm235_vm1, %v3261_v59  ;;  %v1519_v22 = vpop.permute.xlu0 %1518 }
 0x1b9   :  { %2583 = vmatprep.subr.msk.mxu1 %vm235_vm1, %v1519_v22 }
 0x1ba   :  { %v1206_v24 = vpop.permute.xlu1 %1205  ;;  %2584 = vmatpush3.xpose.msk.msra.mxu1 %vm235_vm1, %v1519_v22 }
 0x1bb   :  { %2568 = vmatpush3.xpose.msk.msra.mxu0 %vm235_vm1, %v3261_v59 }
 0x1bc   :  { %2569 = vmatprep.subr.msk.mxu0 %vm235_vm1, %v1210_v3  ;;  %v1511_v25 = vpop.permute.xlu0 %1510 }
 0x1bd   :  { %2585 = vmatprep.mubr.msk.f32.mxu1 %vm235_vm1, %v1511_v25  ;;  %v604_v25 = vsel %vm235_vm1, %v3294_v8, 0.0 }
 0x1be   :  { %v1640_v26 = vpop.permute.xlu1 %1639  ;;  %2586 = vmatmul.mubr.msk.f32.vlgmr.msra.gmra.mxu1 %vm235_vm1, %v1513_v20 }
 0x1bf   :  { %2570 = vmatpush3.xpose.msk.msra.mxu0 %vm235_vm1, %v1210_v3 }
 0x1c0   :  { %2591 = vmatprep.subr.msk.mxu0 %vm235_vm1, %v1642_v9  ;;  %v1638_v28 = vpop.permute.xlu0 %1637 }
 0x1c2   :  { %2572 = vmatmul.mubr.msk.f32.vlgmr.msra.gmra.mxu0 %vm235_vm1, %v1204_v10  ;;  %v1208_v30 = vpop.permute.xlu1 %1207 }
 0x1c3   :  { %2574 = vmatprep.mubr.msk.f32.mxu0 %vm235_vm1, %v1206_v24  ;;  %2592 = vmatpush3.xpose.msk.msra.mxu0 %vm235_vm1, %v1642_v9  ;;  %v208_v9 = vadd.s32 24, %v205_v60 }
 0x1c4   :  { %2593 = vmatprep.subr.msk.mxu0 %vm235_vm1, %v1640_v26  ;;  %v1515_v31 = vpop.permute.xlu0 %1514 }
 0x1c5   :  { %2588 = vmatprep.mubr.msk.f32.mxu1 %vm235_vm1, %v1515_v31  ;;  %vm3388_vm3 = vcmp.gt.s32.totalorder %v210_v63, %v208_v9 }
 0x1c6   :  { %2575 = vmatmul.mubr.msk.f32.gmra.mxu0 %vm235_vm1, %v1208_v30  ;;  %v1636_v33 = vpop.permute.xlu1 %1635 }
 0x1c7   :  { %2594 = vmatpush3.xpose.msk.msra.mxu0 %vm235_vm1, %v1640_v26 }
 0x1c8   :  { %2595 = vmatprep.subr.msk.mxu0 %vm235_vm1, %v1638_v28  ;;  %v1517_v32 = vpop.permute.xlu0 %1516 }
 0x1c9   :  { %2589 = vmatmul.mubr.msk.f32.gmra.mxu1 %vm235_vm1, %v1517_v32 }
 0x1ca   :  { %v1630_v35 = vpop.permute.xlu1 %1629 }
 0x1cb   :  { %2596 = vmatpush3.xpose.msk.msra.mxu0 %vm235_vm1, %v1638_v28 }
 0x1cc   :  { %2597 = vmatprep.subr.msk.mxu0 %vm235_vm1, %v1636_v33  ;;  %v1628_v34 = vpop.permute.xlu0 %1627 }
 0x1cd   :  { %2599 = vmatprep.mubr.msk.f32.mxu0 %vm235_vm1, %v1628_v34 }
 0x1ce   :  { %v1634_v40 = vpop.permute.xlu1 %1633 }
 0x1cf   :  { %2598 = vmatpush3.xpose.msk.msra.mxu0 %vm235_vm1, %v1636_v33  ;;  %v207_v33 = vadd.s32 16, %v205_v60 }
 0x1d0   :  { %v1632_v37 = vpop.permute.xlu0 %1631 }
 0x1d1   :  { %593 = vadd.xlane.f32.xlu0 %v592_v38  ;;  %vm3418_vm5 = vcmp.gt.s32.totalorder %v210_v63, %v207_v33 }
 0x1d2   :  { %2600 = vmatmul.mubr.msk.f32.vlgmr.msra.gmra.mxu0 %vm235_vm1, %v1630_v35 }
 0x1d3   :  { %2602 = vmatprep.mubr.msk.f32.mxu0 %vm235_vm1, %v1632_v37 }
 0x1d5   :  { %602 = vadd.xlane.f32.xlu0 %v601_v39 }
 0x1d6   :  { %2603 = vmatmul.mubr.msk.f32.gmra.mxu0 %vm235_vm1, %v1634_v40 }
 0x1d7   :  { %v3354_v42 = vpop.permute.xlu0 %998 }
 0x1d8   :  { %v1023_v11 = vsel %vm235_vm1, %v3354_v42, 0.0 }
 0x1db   :  { %v3358_v45 = vpop.permute.xlu0 %1424 }
 0x1df   :  { %v3361_v48 = vpop.permute.xlu0 %1850 }
 0x1e3   :  { %v3364_v50 = vpop.permute.xlu0 %996 }
 0x1e7   :  { %v3366_v51 = vpop.permute.xlu0 %1422 }
 0x1eb   :  { %1004 = vrot.lane.b32.xlu0 %v582_v41, %s2956_s10  ;;  %v3368_v52 = vpop.permute.xlu0 %1848 }
 0x1ef   :  { %v1429_v43 = vpop.permute.xlu1 %1428  ;;  %1430 = vrot.lane.b32.xlu0 %v582_v41, %s2957_s11  ;;  %v1003_v54 = vpop.permute.xlu0 %1002 }
 0x1f0   :  { %v1029_v55 = vsel %vm235_vm1, %v1003_v54, 0.0  ;;  %v1455_v56 = vsel %vm235_vm1, %v1429_v43, 0.0 }
 0x1f3   :  { %v1855_v44 = vpop.permute.xlu1 %1854  ;;  %1856 = vrot.lane.b32.xlu0 %v582_v41, %s2958_s12 }
 0x1f4   :  { %v1881_v58 = vsel %vm235_vm1, %v1855_v44, 0.0 }
 0x1f7   :  { %v1001_v46 = vpop.permute.xlu1 %1000 }
 0x1f8   :  { %v1026_v47 = vsel %vm235_vm1, %v1001_v46, 0.0 }
 0x1f9   :  { %1027 = vadd.xlane.f32.xlu1 %v1026_v47 }
 0x1fb   :  { %v1427_v49 = vpop.permute.xlu1 %1426 }
 0x1fc   :  { %v1452_v27 = vsel %vm235_vm1, %v1427_v49, 0.0 }
 0x1fd   :  { %1453 = vadd.xlane.f32.xlu1 %v1452_v27 }
 0x200   :  { %v1007_v59 = vpop.permute.xlu1 %1006 }
 0x201   :  { %v1035_v61 = vsel %vm235_vm1, %v1007_v59, 0.0 }
 0x212   :  { %599 = vadd.xlane.f32.xlu0 %v598_v53 }
 0x216   :  { %1030 = vadd.xlane.f32.xlu0 %v1029_v55 }
 0x21a   :  { %1456 = vadd.xlane.f32.xlu0 %v1455_v56 }
 0x21e   :  { %1882 = vadd.xlane.f32.xlu0 %v1881_v58 }
 0x222   :  { %1036 = vadd.xlane.f32.xlu0 %v1035_v61 }
 0x225   :  { %v3375_v0 = vpop.xlane.xlu0 %596 }
 0x226   :  { %v2503_v3 = vpop.f32.mrf.mxu1 }
 0x227   :  { %v3384_v6 = vsel %vm3377_vm2, -inf, %v2503_v3 }
 0x228   :  { %v477_v7 = vsel %vm74_vm0, %v3384_v6, -inf  ;;  %v322_v10 = vpop.f32.mrf.mxu1 }
 0x229   :  { %v1853_v4 = vpop.permute.xlu0 %1852  ;;  %v3438_v54 = vsel %vm3402_vm4, -inf, %v322_v10 }
 0x22a   :  { %v1878_v5 = vsel %vm235_vm1, %v1853_v4, 0.0  ;;  %v474_v55 = vsel %vm74_vm0, %v3438_v54, -inf }
 0x22b   :  { %1879 = vadd.xlane.f32.xlu1 %v1878_v5 }
 0x22f   :  { %478 = vmax.xlane.f32.xlu1 %v477_v7 }
 0x23b   :  { %v2506_v15 = vpop.f32.mrf.mxu1 }
 0x23c   :  { %v3394_v17 = vsel %vm3388_vm3, -inf, %v2506_v15 }
 0x23d   :  { %v483_v20 = vsel %vm74_vm0, %v3394_v17, -inf  ;;  %v332_v35 = vpop.f32.mrf.mxu1 }
 0x23e   :  { %484 = vmax.xlane.f32.xlu1 %v483_v20  ;;  %v3444_v56 = vsel %vm3418_vm5, -inf, %v332_v35 }
 0x23f   :  { %v480_v58 = vsel %vm74_vm0, %v3444_v56, -inf }
 0x24e   :  { %v2517_v22 = vpop.f32.mrf.mxu0 }
 0x24f   :  { %v3400_v24 = vsel %vm3377_vm2, -inf, %v2517_v22 }
 0x250   :  { %v439_v26 = vpop.f32.mrf.mxu0  ;;  %v489_v28 = vsel %vm74_vm0, %v3400_v24, -inf }
 0x251   :  { %v3410_v30 = vsel %vm3402_vm4, -inf, %v439_v26  ;;  %490 = vmax.xlane.f32.xlu1 %v489_v28 }
 0x252   :  { %v486_v31 = vsel %vm74_vm0, %v3410_v30, -inf }
 0x253   :  { %v2531_v39 = vpop.f32.mrf.mxu1 }
 0x254   :  { %v3431_v47 = vsel %vm3377_vm2, -inf, %v2531_v39 }
 0x255   :  { %487 = vmax.xlane.f32.xlu1 %v486_v31  ;;  %v895_v27 = vsel %vm74_vm0, %v3431_v47, -inf  ;;  %v748_v57 = vpop.f32.mrf.mxu1 }
 0x256   :  { %v3456_v63 = vsel %vm3402_vm4, -inf, %v748_v57 }
 0x257   :  { %v2534_v59 = vpop.f32.mrf.mxu1  ;;  %v892_v9 = vsel %vm74_vm0, %v3456_v63, -inf }
 0x258   :  { %v3462_v10 = vsel %vm3388_vm3, -inf, %v2534_v59 }
 0x259   :  { %v758_v3 = vpop.f32.mrf.mxu1  ;;  %v901_v28 = vsel %vm74_vm0, %v3462_v10, -inf }
 0x25a   :  { %v3414_v32 = vpop.xlane.xlu0 %593  ;;  %v3478_v33 = vsel %vm3418_vm5, -inf, %v758_v3 }
 0x25e   :  { %v3416_v34 = vpop.xlane.xlu0 %602 }
 0x25f   :  { %v2520_v37 = vpop.f32.mrf.mxu0 }
 0x260   :  { %v3450_v60 = vsel %vm3388_vm3, -inf, %v2520_v37  ;;  %v3480_v37 = vpop.permute.xlu1 %1432 }
 0x261   :  { %v449_v40 = vpop.f32.mrf.mxu0  ;;  %v495_v62 = vsel %vm74_vm0, %v3450_v60, -inf }
 0x262   :  { %v3424_v41 = vsel %vm3418_vm5, -inf, %v449_v40  ;;  %v1005_v43 = vpop.permute.xlu0 %1004  ;;  %v898_v40 = vsel %vm74_vm0, %v3478_v33, -inf }
 0x263   :  { %v1032_v44 = vsel %vm235_vm1, %v1005_v43, 0.0  ;;  %v492_v46 = vsel %vm74_vm0, %v3424_v41, -inf  ;;  %v2559_v5 = vpop.f32.mrf.mxu1 }
 0x264   :  { %1033 = vadd.xlane.f32.xlu0 %v1032_v44  ;;  %493 = vmax.xlane.f32.xlu1 %v492_v46  ;;  %v3474_v31 = vsel %vm3377_vm2, -inf, %v2559_v5  ;;  %v3502_v57 = vpop.permute.xlu1 %1858 }
 0x265   :  { %v1182_v22 = vpop.f32.mrf.mxu1  ;;  %v1329_v39 = vsel %vm74_vm0, %v3474_v31, -inf }
 0x266   :  { %v1431_v49 = vpop.permute.xlu0 %1430  ;;  %v3488_v43 = vsel %vm3402_vm4, -inf, %v1182_v22 }
 0x267   :  { %v1458_v53 = vsel %vm235_vm1, %v1431_v49, 0.0  ;;  %v1326_v49 = vsel %vm74_vm0, %v3488_v43, -inf }
 0x268   :  { %1459 = vadd.xlane.f32.xlu0 %v1458_v53  ;;  %896 = vmax.xlane.f32.xlu1 %v895_v27 }
 0x26a   :  { %v1857_v38 = vpop.permute.xlu0 %1856 }
 0x26b   :  { %v1884_v42 = vsel %vm235_vm1, %v1857_v38, 0.0 }
 0x26c   :  { %475 = vmax.xlane.f32.xlu0 %v474_v55 }
 0x270   :  { %481 = vmax.xlane.f32.xlu0 %v480_v58 }
 0x272   :  { %v2545_v61 = vpop.f32.mrf.mxu0 }
 0x273   :  { %v3492_v44 = vsel %vm3377_vm2, -inf, %v2545_v61 }
 0x274   :  { %v865_v4 = vpop.f32.mrf.mxu0  ;;  %496 = vmax.xlane.f32.xlu0 %v495_v62  ;;  %v2562_v35 = vpop.f32.mrf.mxu1  ;;  %v907_v53 = vsel %vm74_vm0, %v3492_v44, -inf }
 0x275   :  { %v3506_v58 = vsel %vm3402_vm4, -inf, %v865_v4 }
 0x276   :  { %v2548_v7 = vpop.f32.mrf.mxu0  ;;  %v1192_v46 = vpop.f32.mrf.mxu1  ;;  %v904_v3 = vsel %vm74_vm0, %v3506_v58, -inf }
 0x277   :  { %v3500_v55 = vsel %vm3418_vm5, -inf, %v1192_v46  ;;  %v3520_v4 = vsel %vm3388_vm3, -inf, %v2548_v7 }
 0x278   :  { %v875_v15 = vpop.f32.mrf.mxu0  ;;  %893 = vmax.xlane.f32.xlu0 %v892_v9  ;;  %v1332_v61 = vsel %vm74_vm0, %v3500_v55, -inf  ;;  %v3516_v9 = vpop.permute.xlu1 %1010 }
 0x279   :  { %v3466_v20 = vsel %vm3418_vm5, -inf, %v875_v15 }
 0x27a   :  { %v910_v26 = vsel %vm74_vm0, %v3466_v20, -inf }
 0x27b   :  { %911 = vmax.xlane.f32.xlu1 %v910_v26  ;;  %v913_v26 = vsel %vm74_vm0, %v3520_v4, -inf }
 0x27c   :  { %902 = vmax.xlane.f32.xlu0 %v901_v28  ;;  %v3534_v46 = vpop.permute.xlu1 %1436 }
 0x27e   :  { %v2587_v62 = vpop.f32.mrf.mxu1 }
 0x27f   :  { %1330 = vmax.xlane.f32.xlu1 %v1329_v39  ;;  %v3528_v28 = vsel %vm3377_vm2, -inf, %v2587_v62  ;;  %v3532_v39 = vsel %vm3388_vm3, -inf, %v2562_v35 }
 0x280   :  { %899 = vmax.xlane.f32.xlu0 %v898_v40  ;;  %v1608_v15 = vpop.f32.mrf.mxu1 }
 0x282   :  { %v2573_v27 = vpop.f32.mrf.mxu0 }
 0x283   :  { %1327 = vmax.xlane.f32.xlu1 %v1326_v49  ;;  %v1755_v49 = vsel %vm74_vm0, %v3528_v28, -inf  ;;  %v3546_v35 = vsel %vm3377_vm2, -inf, %v2573_v27 }
 0x284   :  { %v1299_v59 = vpop.f32.mrf.mxu0  ;;  %908 = vmax.xlane.f32.xlu0 %v907_v53  ;;  %v1335_v53 = vsel %vm74_vm0, %v3532_v39, -inf }
 0x285   :  { %v3514_v5 = vsel %vm3402_vm4, -inf, %v1299_v59  ;;  %v3542_v59 = vsel %vm3402_vm4, -inf, %v1608_v15  ;;  %v3556_v15 = vpop.permute.xlu1 %1862 }
 0x286   :  { %v1338_v22 = vsel %vm74_vm0, %v3514_v5, -inf  ;;  %v2576_v40 = vpop.f32.mrf.mxu0 }
 0x287   :  { %1333 = vmax.xlane.f32.xlu1 %v1332_v61  ;;  %v3560_v27 = vsel %vm3388_vm3, -inf, %v2576_v40 }
 0x288   :  { %905 = vmax.xlane.f32.xlu0 %v904_v3  ;;  %v1309_v61 = vpop.f32.mrf.mxu0  ;;  %v1752_v3 = vsel %vm74_vm0, %v3542_v59, -inf  ;;  %v1347_v19 = vsel %vm74_vm0, %v3560_v27, -inf }
 0x289   :  { %v2590_v7 = vpop.f32.mrf.mxu1  ;;  %v1009_v40 = vpop.permute.xlu1 %1008 }
 0x28a   :  { %v3580_v21 = vsel %vm3388_vm3, -inf, %v2590_v7 }
 0x28b   :  { %1339 = vmax.xlane.f32.xlu1 %v1338_v22  ;;  %v1618_v62 = vpop.f32.mrf.mxu1 }
 0x28c   :  { %914 = vmax.xlane.f32.xlu0 %v913_v26  ;;  %v1341_v26 = vsel %vm74_vm0, %v3546_v35, -inf  ;;  %v3554_v23 = vsel %vm3418_vm5, -inf, %v1618_v62  ;;  %v3572_v62 = vsel %vm3418_vm5, -inf, %v1309_v61  ;;  %v1761_v61 = vsel %vm74_vm0, %v3580_v21, -inf }
 0x28f   :  { %1756 = vmax.xlane.f32.xlu1 %v1755_v49 }
 0x290   :  { %1336 = vmax.xlane.f32.xlu0 %v1335_v53  ;;  %v1758_v53 = vsel %vm74_vm0, %v3554_v23, -inf }
 0x292   :  { %v2601_v22 = vpop.f32.mrf.mxu0 }
 0x293   :  { %1753 = vmax.xlane.f32.xlu1 %v1752_v3 }
 0x294   :  { %v1725_v49 = vpop.f32.mrf.mxu0  ;;  %1342 = vmax.xlane.f32.xlu0 %v1341_v26  ;;  %v1344_v26 = vsel %vm74_vm0, %v3572_v62, -inf }
 0x295   :  { %v3568_v18 = vsel %vm3402_vm4, -inf, %v1725_v49  ;;  %v3588_v49 = vsel %vm3377_vm2, -inf, %v2601_v22 }
 0x296   :  { %v1764_v3 = vsel %vm74_vm0, %v3568_v18, -inf  ;;  %v1767_v7 = vsel %vm74_vm0, %v3588_v49, -inf }
 0x297   :  { %1759 = vmax.xlane.f32.xlu1 %v1758_v53  ;;  %v2604_v53 = vpop.f32.mrf.mxu0 }
 0x298   :  { %1348 = vmax.xlane.f32.xlu0 %v1347_v19  ;;  %v1435_v19 = vpop.permute.xlu1 %1434  ;;  %v3596_v8 = vsel %vm3388_vm3, -inf, %v2604_v53 }
 0x299   :  { %v1773_v22 = vsel %vm74_vm0, %v3596_v8, -inf  ;;  %v1464_v1 = vsel %vm235_vm1, %v1435_v19, 0.0  ;;  %v1887_v19 = vsel %vm235_vm1, %v3502_v57, 0.0  ;;  %v589_v57 = vsel %vm235_vm1, %v3196_v29, 0.0 }
 0x29b   :  { %1765 = vmax.xlane.f32.xlu1 %v1764_v3  ;;  %v1020_v3 = vsel %vm235_vm1, %v3364_v50, 0.0  ;;  %v3646_v29 = vpop.xlane.xlu0 %599 }
 0x29c   :  { %1345 = vmax.xlane.f32.xlu0 %v1344_v26  ;;  %v1735_v26 = vpop.f32.mrf.mxu0 }
 0x29d   :  { %v3604_v50 = vsel %vm3418_vm5, -inf, %v1735_v26  ;;  %v1449_v26 = vsel %vm235_vm1, %v3358_v45, 0.0  ;;  %v1875_v45 = vsel %vm235_vm1, %v3361_v48, 0.0  ;;  %v1446_v48 = vsel %vm235_vm1, %v3366_v51, 0.0 }
 0x29e   :  { %v1770_v53 = vsel %vm74_vm0, %v3604_v50, -inf  ;;  %v1893_v51 = vsel %vm235_vm1, %v3556_v15, 0.0 }
 0x29f   :  { %605 = vadd.xlane.f32.xlu1 %v604_v25  ;;  %v1861_v25 = vpop.permute.xlu1 %1860  ;;  %v3650_v38 = vpop.xlane.xlu0 %1030 }
 0x2a0   :  { %1762 = vmax.xlane.f32.xlu0 %v1761_v61 }
 0x2a3   :  { %1021 = vadd.xlane.f32.xlu1 %v1020_v3  ;;  %v3606_v61 = vpop.xlane.xlu1 %1027  ;;  %v1461_v3 = vsel %vm235_vm1, %v3480_v37, 0.0 }
 0x2a4   :  { %1768 = vmax.xlane.f32.xlu0 %v1767_v7 }
 0x2a7   :  { %608 = vadd.xlane.f32.xlu1 %v607_v2  ;;  %v3615_v7 = vpop.xlane.xlu1 %1453 }
 0x2a8   :  { %1774 = vmax.xlane.f32.xlu0 %v1773_v22  ;;  %4281 = vst [vmem:[#allocation20_spill] sm:$0xff] %v3615_v7  ;;  %v1890_v22 = vsel %vm235_vm1, %v1861_v25, 0.0  ;;  %v1038_v25 = vsel %vm235_vm1, %v1009_v40, 0.0  ;;  %v1467_v40 = vsel %vm235_vm1, %v3534_v46, 0.0 }
 0x2ab   :  { %1024 = vadd.xlane.f32.xlu1 %v1023_v11 }
 0x2ac   :  { %1771 = vmax.xlane.f32.xlu0 %v1770_v53 }
 0x2af   :  { %1465 = vadd.xlane.f32.xlu1 %v1464_v1  ;;  %v586_v1 = vsel %vm235_vm1, %v3209_v36, 0.0 }
 0x2b0   :  { %1462 = vadd.xlane.f32.xlu0 %v1461_v3 }
 0x2b3   :  { %1450 = vadd.xlane.f32.xlu1 %v1449_v26  ;;  %v3654_v26 = vpop.xlane.xlu0 %1456 }
 0x2b4   :  { %v3620_v2 = vpop.xlane.xlu1 %1879  ;;  %1885 = vadd.xlane.f32.xlu0 %v1884_v42  ;;  %4283 = vst [vmem:[#allocation22_spill] sm:$0xff] %v3654_v26 }
 0x2b5   :  { %4282 = vst [vmem:[#allocation21_spill] sm:$0xff] %v3620_v2 }
 0x2b7   :  { %1891 = vadd.xlane.f32.xlu1 %v1890_v22  ;;  %v3656_v42 = vpop.xlane.xlu0 %1882 }
 0x2b8   :  { %v3625_v37 = vpop.xlane.xlu1 %478  ;;  %1888 = vadd.xlane.f32.xlu0 %v1887_v19  ;;  %4284 = vst [vmem:[#allocation23_spill] sm:$0xff] %v3656_v42 }
 0x2b9   :  { %v499_v11 = vsub.f32 %v3384_v6, %v3625_v37  ;;  %v1041_v6 = vsel %vm235_vm1, %v3516_v9, 0.0  ;;  %v1872_v9 = vsel %vm235_vm1, %v3368_v52, 0.0 }
 0x2bb   :  { %v508_v53 = vmul.f32 1.442695, %v499_v11  ;;  %1876 = vadd.xlane.f32.xlu1 %v1875_v45  ;;  %v3658_v22 = vpop.xlane.xlu0 %1036 }
 0x2bc   :  { %587 = vadd.xlane.f32.xlu0 %v586_v1 }
 0x2bd   :  { %2648 = vpow2.f32 %v508_v53 }
 0x2c0   :  { %1039 = vadd.xlane.f32.xlu0 %v1038_v25 }
 0x2c4   :  { %590 = vadd.xlane.f32.xlu0 %v589_v57 }
 0x2c7   :  { %v3660_v46 = vpop.xlane.xlu1 %484 }
 0x2c8   :  { %1042 = vadd.xlane.f32.xlu0 %v1041_v6  ;;  %v501_v45 = vsub.f32 %v3394_v17, %v3660_v46 }
 0x2ca   :  { %v3638_v3 = vpop.eup %2648  ;;  %v512_v25 = vmul.f32 1.442695, %v501_v45 }
 0x2cb   :  { %v525_v36 = vsel %vm74_vm0, %v3638_v3, 0.0 }
 0x2cc   :  { %1447 = vadd.xlane.f32.xlu0 %v1446_v48  ;;  %526 = vadd.xlane.f32.xlu1 %v525_v36 }
 0x2d0   :  { %1468 = vadd.xlane.f32.xlu0 %v1467_v40 }
 0x2d4   :  { %1873 = vadd.xlane.f32.xlu0 %v1872_v9 }
 0x2d8   :  { %1894 = vadd.xlane.f32.xlu0 %v1893_v51 }
 0x2da   :  { %v3664_v11 = vpop.xlane.xlu1 %490 }
 0x2db   :  { %v503_v48 = vsub.f32 %v3400_v24, %v3664_v11 }
 0x2dd   :  { %v516_v51 = vmul.f32 1.442695, %v503_v48 }
 0x2de   :  { %v3670_v53 = vpop.xlane.xlu1 %487 }
 0x2df   :  { %v502_v24 = vsub.f32 %v3410_v30, %v3670_v53 }
 0x2ed   :  { %v3662_v19 = vpop.xlane.xlu0 %1033  ;;  %v3676_v57 = vpop.xlane.xlu1 %493 }
 0x2ee   :  { %4285 = vst [vmem:[#allocation24_spill] sm:$0xff] %v3662_v19  ;;  %v504_v40 = vsub.f32 %v3424_v41, %v3676_v57  ;;  %v514_v41 = vmul.f32 1.442695, %v502_v24 }
 0x2f1   :  { %v3666_v52 = vpop.xlane.xlu0 %1459  ;;  %v3692_v42 = vpop.xlane.xlu1 %896 }
 0x2f2   :  { %4286 = vst [vmem:[#allocation25_spill] sm:$0xff] %v3666_v52 }
 0x2f5   :  { %v3672_v15 = vpop.xlane.xlu0 %475 }
 0x2f6   :  { %v498_v1 = vsub.f32 %v3438_v54, %v3672_v15 }
 0x2f8   :  { %v506_v6 = vmul.f32 1.442695, %v498_v1  ;;  %v518_v1 = vmul.f32 1.442695, %v504_v40 }
 0x2f9   :  { %v3680_v36 = vpop.xlane.xlu0 %481 }
 0x2fa   :  { %2650 = vpow2.f32 %v506_v6  ;;  %v500_v17 = vsub.f32 %v3444_v56, %v3680_v36 }
 0x2fb   :  { %2652 = vpow2.f32 %v512_v25  ;;  %v917_v25 = vsub.f32 %v3431_v47, %v3692_v42 }
 0x2fc   :  { %v510_v9 = vmul.f32 1.442695, %v500_v17 }
 0x2fd   :  { %v3686_v54 = vpop.xlane.xlu0 %496  ;;  %v926_v40 = vmul.f32 1.442695, %v917_v25 }
 0x2fe   :  { %v505_v45 = vsub.f32 %v3450_v60, %v3686_v54  ;;  %2654 = vpow2.f32 %v510_v9 }
 0x2ff   :  { %2656 = vpow2.f32 %v516_v51 }
 0x300   :  { %v520_v6 = vmul.f32 1.442695, %v505_v45 }
 0x301   :  { %v3694_v56 = vpop.xlane.xlu0 %893 }
 0x302   :  { %2658 = vpow2.f32 %v520_v6  ;;  %v916_v30 = vsub.f32 %v3456_v63, %v3694_v56 }
 0x303   :  { %2660 = vpow2.f32 %v518_v1 }
 0x304   :  { %v3698_v48 = vpop.xlane.xlu1 %911  ;;  %2662 = vpow2.f32 %v514_v41  ;;  %v924_v47 = vmul.f32 1.442695, %v916_v30 }
 0x305   :  { %4287 = vst [vmem:[#allocation26_spill] sm:$0xff] %v3698_v48  ;;  %v3700_v60 = vpop.xlane.xlu0 %902  ;;  %2664 = vpow2.f32 %v926_v40 }
 0x306   :  { %v919_v24 = vsub.f32 %v3462_v10, %v3700_v60  ;;  %2666 = vpow2.f32 %v924_v47 }
 0x307   :  { %v3702_v17 = vpop.eup %2650 }
 0x308   :  { %v3706_v9 = vpop.xlane.xlu1 %1330  ;;  %v522_v51 = vsel %vm74_vm0, %v3702_v17, 0.0  ;;  %v3710_v45 = vpop.eup %2652  ;;  %v930_v10 = vmul.f32 1.442695, %v919_v24 }
 0x309   :  { %v3712_v1 = vpop.xlane.xlu0 %899  ;;  %523 = vadd.xlane.f32.xlu1 %v522_v51  ;;  %v531_v63 = vsel %vm74_vm0, %v3710_v45, 0.0  ;;  %v1351_v24 = vsub.f32 %v3474_v31, %v3706_v9 }
 0x30a   :  { %v918_v52 = vsub.f32 %v3478_v33, %v3712_v1 }
 0x30b   :  { %v3720_v41 = vpop.eup %2654  ;;  %v1360_v31 = vmul.f32 1.442695, %v1351_v24 }
 0x30c   :  { %v3716_v6 = vpop.xlane.xlu1 %1327  ;;  %4288 = vst [vmem:[#allocation27_spill] sm:$0xff] %v3720_v41  ;;  %v3724_v2 = vpop.eup %2656  ;;  %v528_v16 = vsel %vm74_vm0, %v3720_v41, 0.0 }
 0x30d   :  { %v3722_v25 = vpop.xlane.xlu0 %908  ;;  %532 = vadd.xlane.f32.xlu1 %v531_v63  ;;  %4289 = vst [vmem:[#allocation28_spill] sm:$0xff] %v3724_v2  ;;  %v537_v33 = vsel %vm74_vm0, %v3724_v2, 0.0 }
 0x30e   :  { %v921_v51 = vsub.f32 %v3492_v44, %v3722_v25 }
 0x30f   :  { %v3728_v30 = vpop.eup %2658 }
 0x310   :  { %4290 = vst [vmem:[#allocation29_spill] sm:$0xff] %v3728_v30  ;;  %v3730_v40 = vpop.eup %2660  ;;  %v934_v7 = vmul.f32 1.442695, %v921_v51  ;;  %v3734_v26 = vpop.xlane.xlu1 %1333  ;;  %v543_v63 = vsel %vm74_vm0, %v3728_v30, 0.0  ;;  %v928_v51 = vmul.f32 1.442695, %v918_v52 }
 0x311   :  { %4291 = vst [vmem:[#allocation30_spill] sm:$0xff] %v3734_v26  ;;  %v3740_v19 = vpop.xlane.xlu0 %905  ;;  %544 = vadd.xlane.f32.xlu0 %v543_v63  ;;  %529 = vadd.xlane.f32.xlu1 %v528_v16  ;;  %v540_v47 = vsel %vm74_vm0, %v3730_v40, 0.0  ;;  %v3752_v63 = vpop.eup %2662  ;;  %v922_v16 = vsub.f32 %v3466_v20, %v3698_v48 }
 0x312   :  { %2668 = vpow2.f32 %v934_v7  ;;  %v920_v44 = vsub.f32 %v3506_v58, %v3740_v19  ;;  %v534_v2 = vsel %vm74_vm0, %v3752_v63, 0.0  ;;  %v3766_v20 = vpop.eup %2664 }
 0x313   :  { %2670 = vpow2.f32 %v930_v10  ;;  %v1350_v10 = vsub.f32 %v3488_v43, %v3716_v6  ;;  %v936_v48 = vmul.f32 1.442695, %v922_v16  ;;  %v943_v24 = vsel %vm74_vm0, %v3766_v20, 0.0 }
 0x314   :  { %v932_v41 = vmul.f32 1.442695, %v920_v44  ;;  %v3750_v30 = vpop.xlane.xlu1 %1339 }
 0x315   :  { %v3756_v58 = vpop.xlane.xlu0 %914  ;;  %538 = vadd.xlane.f32.xlu1 %v537_v33  ;;  %541 = vadd.xlane.f32.xlu0 %v540_v47  ;;  %v1358_v47 = vmul.f32 1.442695, %v1350_v10 }
 0x316   :  { %v923_v7 = vsub.f32 %v3520_v4, %v3756_v58  ;;  %2672 = vpow2.f32 %v932_v41  ;;  %v3770_v4 = vpop.eup %2666 }
 0x317   :  { %2674 = vpow2.f32 %v928_v51  ;;  %4294 = vst [vmem:[#allocation33_spill] sm:$0xff] %v3770_v4 }
 0x318   :  { %v938_v52 = vmul.f32 1.442695, %v923_v7  ;;  %v3762_v44 = vpop.xlane.xlu1 %1756 }
 0x319   :  { %4292 = vst [vmem:[#allocation31_spill] sm:$0xff] %v3762_v44  ;;  %v3768_v33 = vpop.xlane.xlu0 %1336  ;;  %535 = vadd.xlane.f32.xlu1 %v534_v2  ;;  %v1352_v2 = vsub.f32 %v3500_v55, %v3734_v26 }
 0x31a   :  { %4293 = vst [vmem:[#allocation32_spill] sm:$0xff] %v3768_v33  ;;  %2676 = vpow2.f32 %v938_v52  ;;  %v1353_v43 = vsub.f32 %v3532_v39, %v3768_v33 }
 0x31b   :  { %2678 = vpow2.f32 %v1360_v31  ;;  %v1362_v55 = vmul.f32 1.442695, %v1352_v2 }
 0x31c   :  { %v3774_v41 = vpop.xlane.xlu1 %1753  ;;  %2680 = vpow2.f32 %v936_v48  ;;  %v1364_v10 = vmul.f32 1.442695, %v1353_v43  ;;  %v940_v48 = vsel %vm74_vm0, %v3770_v4, 0.0  ;;  %v1354_v43 = vsub.f32 %v3514_v5, %v3750_v30 }
 0x31d   :  { %4295 = vst [vmem:[#allocation34_spill] sm:$0xff] %v3774_v41  ;;  %v3778_v51 = vpop.xlane.xlu0 %1342  ;;  %944 = vadd.xlane.f32.xlu1 %v943_v24  ;;  %2682 = vpow2.f32 %v1358_v47  ;;  %v1777_v5 = vsub.f32 %v3528_v28, %v3762_v44 }
 0x31e   :  { %v1355_v16 = vsub.f32 %v3546_v35, %v3778_v51 }
 0x31f   :  { %v3784_v7 = vpop.eup %2668  ;;  %v1786_v28 = vmul.f32 1.442695, %v1777_v5 }
 0x320   :  { %4296 = vst [vmem:[#allocation35_spill] sm:$0xff] %v3784_v7  ;;  %v1368_v39 = vmul.f32 1.442695, %v1355_v16  ;;  %v3786_v31 = vpop.xlane.xlu1 %1759  ;;  %v955_v52 = vsel %vm74_vm0, %v3784_v7, 0.0  ;;  %v3792_v24 = vpop.eup %2670 }
 0x321   :  { %4297 = vst [vmem:[#allocation36_spill] sm:$0xff] %v3786_v31  ;;  %v3794_v33 = vpop.xlane.xlu0 %1348  ;;  %956 = vadd.xlane.f32.xlu0 %v955_v52  ;;  %941 = vadd.xlane.f32.xlu1 %v940_v48  ;;  %v949_v4 = vsel %vm74_vm0, %v3792_v24, 0.0 }
 0x322   :  { %4298 = vst [vmem:[#allocation37_spill] sm:$0xff] %v3794_v33  ;;  %2684 = vpow2.f32 %v1368_v39  ;;  %v1357_v35 = vsub.f32 %v3560_v27, %v3794_v33  ;;  %v1366_v39 = vmul.f32 1.442695, %v1354_v43  ;;  %v1776_v43 = vsub.f32 %v3542_v59, %v3774_v41 }
 0x323   :  { %v3798_v47 = vpop.eup %2672  ;;  %2686 = vpow2.f32 %v1364_v10 }
 0x324   :  { %4299 = vst [vmem:[#allocation38_spill] sm:$0xff] %v3798_v47  ;;  %v1372_v16 = vmul.f32 1.442695, %v1357_v35  ;;  %v3802_v7 = vpop.xlane.xlu1 %1765  ;;  %v3806_v26 = vpop.eup %2674  ;;  %v952_v2 = vsel %vm74_vm0, %v3798_v47, 0.0  ;;  %2688 = vpow2.f32 %v1362_v55  ;;  %v1784_v59 = vmul.f32 1.442695, %v1776_v43 }
 0x325   :  { %4300 = vst [vmem:[#allocation39_spill] sm:$0xff] %v3802_v7  ;;  %4301 = vst [vmem:[#allocation40_spill] sm:$0xff] %v3806_v26  ;;  %v3808_v52 = vpop.xlane.xlu0 %1345  ;;  %950 = vadd.xlane.f32.xlu1 %v949_v4  ;;  %953 = vadd.xlane.f32.xlu0 %v952_v2  ;;  %v946_v33 = vsel %vm74_vm0, %v3806_v26, 0.0 }
 0x326   :  { %v1356_v27 = vsub.f32 %v3572_v62, %v3808_v52  ;;  %2690 = vpow2.f32 %v1372_v16 }
 0x327   :  { %v3816_v10 = vpop.eup %2676 }
 0x328   :  { %v1370_v48 = vmul.f32 1.442695, %v1356_v27  ;;  %v3818_v35 = vpop.xlane.xlu1 %605  ;;  %v3822_v47 = vpop.eup %2678  ;;  %v961_v62 = vsel %vm74_vm0, %v3816_v10, 0.0 }
 0x329   :  { %4302 = vst [vmem:[#allocation41_spill] sm:$0xff] %v3822_v47  ;;  %v3824_v4 = vpop.xlane.xlu0 %1762  ;;  %947 = vadd.xlane.f32.xlu1 %v946_v33  ;;  %v3828_v55 = vpop.eup %2680  ;;  %962 = vadd.xlane.f32.xlu0 %v961_v62  ;;  %v1377_v27 = vsel %vm74_vm0, %v3822_v47, 0.0 }
 0x32a   :  { %4303 = vst [vmem:[#allocation42_spill] sm:$0xff] %v3824_v4  ;;  %4304 = vst [vmem:[#allocation43_spill] sm:$0xff] %v3828_v55  ;;  %2692 = vpow2.f32 %v1370_v48  ;;  %v3832_v16 = vpop.eup %2682  ;;  %v958_v33 = vsel %vm74_vm0, %v3828_v55, 0.0 }
 0x32b   :  { %4305 = vst [vmem:[#allocation44_spill] sm:$0xff] %v3832_v16  ;;  %2694 = vpow2.f32 %v1366_v39  ;;  %v1779_v39 = vsub.f32 %v3580_v21, %v3824_v4  ;;  %v1778_v21 = vsub.f32 %v3554_v23, %v3786_v31 }
 0x32c   :  { %v3834_v2 = vpop.xlane.xlu1 %1021  ;;  %2696 = vpow2.f32 %v1786_v28 }
 0x32d   :  { %v3838_v26 = vpop.xlane.xlu0 %1768  ;;  %1378 = vadd.xlane.f32.xlu1 %v1377_v27  ;;  %959 = vadd.xlane.f32.xlu0 %v958_v33  ;;  %v1374_v27 = vsel %vm74_vm0, %v3832_v16, 0.0  ;;  %v1790_v33 = vmul.f32 1.442695, %v1779_v39  ;;  %v1788_v39 = vmul.f32 1.442695, %v1778_v21 }
 0x32e   :  { %v1781_v5 = vsub.f32 %v3588_v49, %v3838_v26 }
 0x32f   :  { %v3844_v48 = vpop.eup %2684 }
 0x330   :  { %4306 = vst [vmem:[#allocation45_spill] sm:$0xff] %v3844_v48  ;;  %v1794_v62 = vmul.f32 1.442695, %v1781_v5  ;;  %v3848_v41 = vpop.xlane.xlu1 %608  ;;  %v1389_v47 = vsel %vm74_vm0, %v3844_v48, 0.0  ;;  %v3854_v55 = vpop.eup %2686 }
 0x331   :  { %4307 = vst [vmem:[#allocation46_spill] sm:$0xff] %v3854_v55  ;;  %v3856_v49 = vpop.xlane.xlu0 %1774  ;;  %1375 = vadd.xlane.f32.xlu1 %v1374_v27  ;;  %1390 = vadd.xlane.f32.xlu0 %v1389_v47  ;;  %v3858_v28 = vpop.eup %2688  ;;  %v1383_v4 = vsel %vm74_vm0, %v3854_v55, 0.0 }
 0x332   :  { %2698 = vpow2.f32 %v1794_v62  ;;  %v1783_v5 = vsub.f32 %v3596_v8, %v3856_v49  ;;  %v1780_v8 = vsub.f32 %v3568_v18, %v3802_v7  ;;  %v1380_v62 = vsel %vm74_vm0, %v3858_v28, 0.0 }
 0x333   :  { %v3862_v43 = vpop.eup %2690  ;;  %2700 = vpow2.f32 %v1784_v59 }
 0x334   :  { %4308 = vst [vmem:[#allocation47_spill] sm:$0xff] %v3862_v43  ;;  %v3866_v48 = vpop.xlane.xlu1 %1024  ;;  %v1395_v47 = vsel %vm74_vm0, %v3862_v43, 0.0  ;;  %2702 = vpow2.f32 %v1790_v33  ;;  %v1798_v55 = vmul.f32 1.442695, %v1783_v5  ;;  %v1792_v5 = vmul.f32 1.442695, %v1780_v8 }
 0x335   :  { %v3870_v27 = vpop.xlane.xlu0 %1771  ;;  %1384 = vadd.xlane.f32.xlu1 %v1383_v4  ;;  %1396 = vadd.xlane.f32.xlu0 %v1395_v47 }
 0x336   :  { %4309 = vst [vmem:[#allocation48_spill] sm:$0xff] %v3870_v27  ;;  %v1782_v23 = vsub.f32 %v3604_v50, %v3870_v27 }
 0x337   :  { %v3876_v59 = vpop.eup %2692 }
 0x338   :  { %4310 = vst [vmem:[#allocation49_spill] sm:$0xff] %v3876_v59  ;;  %v1796_v16 = vmul.f32 1.442695, %v1782_v23  ;;  %v3882_v31 = vpop.xlane.xlu1 %1465  ;;  %v1392_v4 = vsel %vm74_vm0, %v3876_v59, 0.0  ;;  %v3886_v43 = vpop.eup %2694 }
 0x339   :  { %4311 = vst [vmem:[#allocation50_spill] sm:$0xff] %v3886_v43  ;;  %v3890_v21 = vpop.xlane.xlu0 %1462  ;;  %1381 = vadd.xlane.f32.xlu1 %v1380_v62  ;;  %1393 = vadd.xlane.f32.xlu0 %v1392_v4  ;;  %v3894_v33 = vpop.eup %2696  ;;  %v1386_v23 = vsel %vm74_vm0, %v3886_v43, 0.0 }
 0x33a   :  { %2704 = vpow2.f32 %v1796_v16  ;;  %4312 = vst [vmem:[#allocation51_spill] sm:$0xff] %v3894_v33 }
 0x33b   :  { %2706 = vpow2.f32 %v1788_v39 }
 0x33c   :  { %2708 = vpow2.f32 %v1798_v55  ;;  %v3896_v47 = vpop.xlane.xlu1 %1450  ;;  %v1803_v55 = vsel %vm74_vm0, %v3894_v33, 0.0 }
 0x33d   :  { %v3900_v59 = vpop.xlane.xlu0 %1885  ;;  %1387 = vadd.xlane.f32.xlu1 %v1386_v23  ;;  %2710 = vpow2.f32 %v1792_v5 }
 0x33e   :  { %4313 = vst [vmem:[#allocation52_spill] sm:$0xff] %v3900_v59 }
 0x33f   :  { %v3904_v62 = vpop.eup %2698 }
 0x340   :  { %4314 = vst [vmem:[#allocation53_spill] sm:$0xff] %v3904_v62  ;;  %v3906_v4 = vpop.xlane.xlu1 %1891  ;;  %v1815_v39 = vsel %vm74_vm0, %v3904_v62, 0.0  ;;  %v3912_v8 = vpop.eup %2700 }
 0x341   :  { %4315 = vst [vmem:[#allocation54_spill] sm:$0xff] %v3906_v4  ;;  %4316 = vst [vmem:[#allocation55_spill] sm:$0xff] %v3912_v8  ;;  %v3916_v23 = vpop.xlane.xlu0 %1888  ;;  %1816 = vadd.xlane.f32.xlu0 %v1815_v39  ;;  %1804 = vadd.xlane.f32.xlu1 %v1803_v55  ;;  %v1800_v18 = vsel %vm74_vm0, %v3912_v8, 0.0  ;;  %v3924_v62 = vpop.eup %2702 }
 0x342   :  { %4318 = vst [vmem:[#allocation57_spill] sm:$0xff] %v3924_v62  ;;  %v1809_v55 = vsel %vm74_vm0, %v3924_v62, 0.0 }
 0x344   :  { %v3920_v16 = vpop.xlane.xlu1 %1876 }
 0x345   :  { %4317 = vst [vmem:[#allocation56_spill] sm:$0xff] %v3920_v16  ;;  %v588_v43 = vpop.xlane.xlu0 %587  ;;  %1801 = vadd.xlane.f32.xlu1 %v1800_v18 }
 0x347   :  { %v3928_v50 = vpop.eup %2704 }
 0x348   :  { %4319 = vst [vmem:[#allocation58_spill] sm:$0xff] %v3928_v50  ;;  %v3930_v27 = vpop.eup %2706  ;;  %v1818_v39 = vsel %vm74_vm0, %v3928_v50, 0.0 }
 0x349   :  { %4320 = vst [vmem:[#allocation59_spill] sm:$0xff] %v3930_v27  ;;  %v3936_v5 = vpop.eup %2708  ;;  %v3938_v8 = vpop.xlane.xlu0 %1039  ;;  %1819 = vadd.xlane.f32.xlu0 %v1818_v39  ;;  %1810 = vadd.xlane.f32.xlu1 %v1809_v55  ;;  %v1806_v18 = vsel %vm74_vm0, %v3930_v27, 0.0 }
 0x34a   :  { %4321 = vst [vmem:[#allocation60_spill] sm:$0xff] %v3936_v5  ;;  %v1821_v33 = vsel %vm74_vm0, %v3936_v5, 0.0  ;;  %v3944_v44 = vpop.eup %2710 }
 0x34b   :  { %4322 = vst [vmem:[#allocation61_spill] sm:$0xff] %v3944_v44  ;;  %v1812_v62 = vsel %vm74_vm0, %v3944_v44, 0.0 }
 0x34d   :  { %v591_v16 = vpop.xlane.xlu0 %590  ;;  %1822 = vadd.xlane.f32.xlu0 %v1821_v33  ;;  %1807 = vadd.xlane.f32.xlu1 %v1806_v18 }
 0x34e   :  { %v611_v50 = vsub.f32 %v591_v16, %v3625_v37  ;;  %v612_v37 = vsub.f32 %v3414_v32, %v3680_v36  ;;  %v616_v32 = vsub.f32 %v3818_v35, %v3676_v57 }
 0x350   :  { %v620_v39 = vmul.f32 1.442695, %v611_v50 }
 0x351   :  { %v3949_v4 = vpop.xlane.xlu0 %1042  ;;  %1813 = vadd.xlane.f32.xlu1 %v1812_v62 }
 0x352   :  { %2712 = vpow2.f32 %v620_v39  ;;  %v613_v39 = vsub.f32 %v3375_v0, %v3660_v46  ;;  %v614_v0 = vsub.f32 %v3646_v29, %v3670_v53  ;;  %v1047_v53 = vsub.f32 %v3650_v38, %v3700_v60 }
 0x353   :  { %v1046_v38 = vsub.f32 %v3606_v61, %v3712_v1  ;;  %v1049_v61 = vsub.f32 %v3658_v22, %v3722_v25  ;;  %v4327_v22 = vld [vmem:[#allocation15_spill] sm:$0xff] }
 0x354   :  { %v624_v59 = vmul.f32 1.442695, %v613_v39 }
 0x355   :  { %v3951_v55 = vpop.xlane.xlu0 %1447  ;;  %v527_v5 = vpop.xlane.xlu1 %526 }
 0x356   :  { %2714 = vrcp.f32 %v527_v5  ;;  %v610_v5 = vsub.f32 %v588_v43, %v3672_v15 }
 0x359   :  { %v3953_v27 = vpop.xlane.xlu0 %1468 }
 0x35d   :  { %v3955_v7 = vpop.xlane.xlu0 %1873 }
 0x35e   :  { %4323 = vst [vmem:[#allocation62_spill] sm:$0xff] %v3955_v7  ;;  %v618_v7 = vmul.f32 1.442695, %v610_v5 }
 0x35f   :  { %v2713_v16 = vpop.eup %2712 }
 0x360   :  { %2716 = vpow2.f32 %v618_v7 }
 0x361   :  { %v3957_v33 = vpop.xlane.xlu0 %1894 }
 0x363   :  { %v2715_v18 = vpop.eup %2714 }
 0x364   :  { %v563_v44 = vmul.f32 %v2715_v18, %v3638_v3  ;;  %v635_v62 = vmul.f32 %v2715_v18, %v2713_v16  ;;  %v622_v16 = vmul.f32 1.442695, %v612_v37  ;;  %v617_v18 = vsub.f32 %v3848_v41, %v3686_v54 }
 0x365   :  { %v1045_v54 = vsub.f32 %v3866_v48, %v3692_v42 }
 0x366   :  { %1937 = vst.msk [vmem:[#allocation9 + $0x8] sm:$0xff] %vm74_vm0, %v563_v44  ;;  %v643_v50 = vmul.f32 %v3019_v12, %v635_v62  ;;  %v615_v44 = vsub.f32 %v3416_v34, %v3664_v11  ;;  %v632_v46 = vmul.f32 1.442695, %v617_v18  ;;  %v626_v34 = vmul.f32 1.442695, %v614_v0 }
 0x367   :  { %v630_v11 = vmul.f32 1.442695, %v616_v32  ;;  %v1044_v62 = vsub.f32 %v3834_v2, %v3694_v56  ;;  %v4325_v32 = vld [vmem:[#allocation24_spill] sm:$0xff] }
 0x368   :  { %1978 = vrot.lane.b32.xlu0 %v643_v50, %s2960_s14  ;;  %v628_v43 = vmul.f32 1.442695, %v615_v44  ;;  %v1054_v50 = vmul.f32 1.442695, %v1045_v54 }
 0x369   :  { %v1052_v44 = vmul.f32 1.442695, %v1044_v62  ;;  %v1471_v62 = vsub.f32 %v3896_v47, %v3706_v9  ;;  %v1051_v47 = vsub.f32 %v3949_v4, %v3756_v58 }
 0x36d   :  { %v2717_v37 = vpop.eup %2716 }
 0x392   :  { %v524_v3 = vpop.xlane.xlu1 %523 }
 0x393   :  { %2718 = vrcp.f32 %v524_v3  ;;  %v1058_v3 = vmul.f32 1.442695, %v1047_v53 }
 0x394   :  { %2720 = vpow2.f32 %v624_v59 }
 0x396   :  { %v533_v15 = vpop.xlane.xlu1 %532 }
 0x397   :  { %2722 = vrcp.f32 %v533_v15 }
 0x398   :  { %2724 = vpow2.f32 %v622_v16 }
 0x39a   :  { %v545_v36 = vpop.xlane.xlu0 %544  ;;  %v530_v7 = vpop.xlane.xlu1 %529 }
 0x39b   :  { %2726 = vrcp.f32 %v545_v36  ;;  %v4326_v36 = vld [vmem:[#allocation27_spill] sm:$0xff] }
 0x39c   :  { %2728 = vrcp.f32 %v530_v7 }
 0x39d   :  { %2730 = vpow2.f32 %v628_v43  ;;  %v1056_v43 = vmul.f32 1.442695, %v1046_v38 }
 0x39e   :  { %2732 = vpow2.f32 %v632_v46  ;;  %v542_v41 = vpop.xlane.xlu0 %541  ;;  %v539_v59 = vpop.xlane.xlu1 %538  ;;  %v1048_v46 = vsub.f32 %v4325_v32, %v3740_v19  ;;  %v1062_v19 = vmul.f32 1.442695, %v1049_v61 }
 0x39f   :  { %2734 = vrcp.f32 %v542_v41 }
 0x3a0   :  { %v2719_v29 = vpop.eup %2718  ;;  %2736 = vrcp.f32 %v539_v59 }
 0x3a1   :  { %2738 = vpow2.f32 %v626_v34  ;;  %v562_v57 = vmul.f32 %v2719_v29, %v3702_v17  ;;  %v634_v35 = vmul.f32 %v2719_v29, %v2717_v37  ;;  %v2721_v42 = vpop.eup %2720 }
 0x3a2   :  { %2740 = vpow2.f32 %v630_v11  ;;  %v536_v5 = vpop.xlane.xlu1 %535 }
 0x3a3   :  { %1936 = vst.msk [vmem:[#allocation9] sm:$0xff] %vm74_vm0, %v562_v57  ;;  %2742 = vrcp.f32 %v536_v5  ;;  %v642_v48 = vmul.f32 %v634_v35, %v3023_v13  ;;  %v1060_v35 = vmul.f32 1.442695, %v1048_v46 }
 0x3a4   :  { %v2723_v39 = vpop.eup %2722  ;;  %2744 = vpow2.f32 %v1054_v50  ;;  %v4328_v50 = vld [vmem:[#allocation28_spill] sm:$0xff] }
 0x3a5   :  { %v565_v60 = vmul.f32 %v2723_v39, %v3710_v45  ;;  %1976 = vrot.lane.b32.xlu0 %v642_v48, %s2960_s14  ;;  %v637_v17 = vmul.f32 %v2723_v39, %v2721_v42  ;;  %v2725_v2 = vpop.eup %2724  ;;  %v4324_v45 = vld [vmem:[#allocation29_spill] sm:$0xff] }
 0x3a6   :  { %v945_v56 = vpop.xlane.xlu1 %944 }
 0x3a7   :  { %1939 = vst.msk [vmem:[#allocation9 + $0x18] sm:$0xff] %vm74_vm0, %v565_v60  ;;  %2746 = vrcp.f32 %v945_v56  ;;  %v645_v16 = vmul.f32 %v3027_v14, %v637_v17  ;;  %v4330_v17 = vld [vmem:[#allocation16_spill] sm:$0xff] }
 0x3a8   :  { %v2727_v18 = vpop.eup %2726  ;;  %2748 = vpow2.f32 %v1058_v3 }
 0x3a9   :  { %v2729_v15 = vpop.eup %2728  ;;  %v569_v1 = vmul.f32 %v2727_v18, %v4324_v45  ;;  %1982 = vrot.lane.b32.xlu1 %v645_v16, %s2960_s14  ;;  %2750 = vpow2.f32 %v1052_v44  ;;  %v1480_v16 = vmul.f32 1.442695, %v1471_v62  ;;  %v4331_v45 = vld [vmem:[#allocation17_spill] sm:$0xff] }
 0x3aa   :  { %v2731_v0 = vpop.eup %2730  ;;  %v564_v7 = vmul.f32 %v2729_v15, %v4326_v36  ;;  %v957_v34 = vpop.xlane.xlu0 %956  ;;  %v636_v54 = vmul.f32 %v2729_v15, %v2725_v2 }
 0x3ab   :  { %v942_v11 = vpop.xlane.xlu1 %941  ;;  %v2733_v41 = vpop.eup %2732  ;;  %1943 = vst.msk [vmem:[#allocation9 + $0x38] sm:$0xff] %vm74_vm0, %v569_v1  ;;  %2752 = vrcp.f32 %v957_v34  ;;  %v4335_v34 = vld [vmem:[#allocation22_spill] sm:$0xff] }
 0x3ac   :  { %v2735_v59 = vpop.eup %2734  ;;  %1938 = vst.msk [vmem:[#allocation9 + $0x10] sm:$0xff] %vm74_vm0, %v564_v7  ;;  %2754 = vrcp.f32 %v942_v11  ;;  %v644_v25 = vmul.f32 %v636_v54, %v4327_v22  ;;  %v641_v37 = vmul.f32 %v2733_v41, %v2727_v18  ;;  %v1470_v18 = vsub.f32 %v3951_v55, %v3716_v6  ;;  %v4334_v7 = vld [vmem:[#allocation32_spill] sm:$0xff] }
 0x3ad   :  { %v2737_v29 = vpop.eup %2736  ;;  %2756 = vpow2.f32 %v1056_v43  ;;  %v568_v53 = vmul.f32 %v2735_v59, %v3730_v40  ;;  %v4329_v40 = vld [vmem:[#allocation18_spill] sm:$0xff]  ;;  %v1066_v6 = vmul.f32 1.442695, %v1051_v47  ;;  %v1473_v11 = vsub.f32 %v4335_v34, %v4334_v7  ;;  %v4344_v7 = vld [vmem:[#allocation40_spill] sm:$0xff] }
 0x3ae   :  { %v2739_v57 = vpop.eup %2738  ;;  %v567_v5 = vmul.f32 %v2737_v29, %v4328_v50  ;;  %1980 = vrot.lane.b32.xlu1 %v644_v25, %s2960_s14  ;;  %v639_v48 = vmul.f32 %v2737_v29, %v2731_v0  ;;  %v954_v3 = vpop.xlane.xlu0 %953  ;;  %v649_v60 = vmul.f32 %v4329_v40, %v641_v37  ;;  %v4333_v0 = vld [vmem:[#allocation26_spill] sm:$0xff]  ;;  %v1478_v54 = vmul.f32 1.442695, %v1470_v18  ;;  %v4340_v18 = vld [vmem:[#allocation25_spill] sm:$0xff] }
 0x3af   :  { %v951_v42 = vpop.xlane.xlu1 %950  ;;  %v2741_v39 = vpop.eup %2740  ;;  %1942 = vst.msk [vmem:[#allocation9 + $0x30] sm:$0xff] %vm74_vm0, %v568_v53  ;;  %v1050_v32 = vsub.f32 %v3938_v8, %v4333_v0  ;;  %v4336_v29 = vld [vmem:[#allocation30_spill] sm:$0xff] }
 0x3b0   :  { %2758 = vrcp.f32 %v951_v42  ;;  %v2743_v38 = vpop.eup %2742  ;;  %1941 = vst.msk [vmem:[#allocation9 + $0x28] sm:$0xff] %vm74_vm0, %v567_v5  ;;  %v647_v44 = vmul.f32 %v4330_v17, %v639_v48  ;;  %v640_v9 = vmul.f32 %v2741_v39, %v2735_v59  ;;  %v1484_v5 = vmul.f32 1.442695, %v1473_v11  ;;  %v4339_v42 = vld [vmem:[#allocation33_spill] sm:$0xff] }
 0x3b1   :  { %2760 = vrcp.f32 %v954_v3  ;;  %v566_v56 = vmul.f32 %v2743_v38, %v3752_v63  ;;  %v638_v2 = vmul.f32 %v2743_v38, %v2739_v57  ;;  %v2745_v43 = vpop.eup %2744  ;;  %v4332_v63 = vld [vmem:[#allocation19_spill] sm:$0xff]  ;;  %v1064_v57 = vmul.f32 1.442695, %v1050_v32 }
 0x3b2   :  { %2762 = vpow2.f32 %v1062_v19  ;;  %1990 = vrot.lane.b32.xlu1 %v649_v60, %s2960_s14  ;;  %1986 = vrot.lane.b32.xlu0 %v647_v44, %s2960_s14  ;;  %v963_v61 = vpop.xlane.xlu0 %962  ;;  %v648_v1 = vmul.f32 %v640_v9, %v4332_v63  ;;  %v4337_v19 = vld [vmem:[#allocation20_spill] sm:$0xff] }
 0x3b3   :  { %2764 = vpow2.f32 %v1060_v35  ;;  %v948_v15 = vpop.xlane.xlu1 %947  ;;  %1940 = vst.msk [vmem:[#allocation9 + $0x20] sm:$0xff] %vm74_vm0, %v566_v56  ;;  %v646_v58 = vmul.f32 %v638_v2, %v4331_v45  ;;  %v1472_v53 = vsub.f32 %v4337_v19, %v4336_v29  ;;  %v4338_v35 = vld [vmem:[#allocation35_spill] sm:$0xff]  ;;  %v4345_v19 = vld [vmem:[#allocation41_spill] sm:$0xff] }
 0x3b4   :  { %2766 = vrcp.f32 %v948_v15  ;;  %v2747_v4 = vpop.eup %2746  ;;  %v1474_v15 = vsub.f32 %v4340_v18, %v3750_v30  ;;  %v4342_v30 = vsub.f32 %v3890_v21, %v3778_v51 }
 0x3b5   :  { %2768 = vrcp.f32 %v963_v61  ;;  %v981_v55 = vmul.f32 %v2747_v4, %v3766_v20  ;;  %v1069_v46 = vmul.f32 %v2747_v4, %v2745_v43  ;;  %v2749_v36 = vpop.eup %2748  ;;  %v4341_v43 = vld [vmem:[#allocation38_spill] sm:$0xff] }
 0x3b6   :  { %2770 = vpow2.f32 %v1480_v16  ;;  %1988 = vrot.lane.b32.xlu1 %v648_v1, %s2960_s14  ;;  %1984 = vrot.lane.b32.xlu0 %v646_v58, %s2960_s14  ;;  %v2751_v59 = vpop.eup %2750  ;;  %v960_v25 = vpop.xlane.xlu0 %959  ;;  %v1482_v16 = vmul.f32 1.442695, %v1472_v53 }
 0x3b7   :  { %v1379_v41 = vpop.xlane.xlu1 %1378  ;;  %1945 = vst.msk [vmem:[#allocation9 + $0x48] sm:$0xff] %vm74_vm0, %v981_v55  ;;  %v1077_v8 = vmul.f32 %v3019_v12, %v1069_v46  ;;  %v1488_v55 = vmul.f32 1.442695, %v4342_v30  ;;  %v4343_v46 = vld [vmem:[#allocation37_spill] sm:$0xff] }
 0x3b8   :  { %2772 = vrcp.f32 %v1379_v41  ;;  %v2753_v20 = vpop.eup %2752 }
 0x3b9   :  { %2774 = vrcp.f32 %v960_v25  ;;  %v2755_v37 = vpop.eup %2754  ;;  %v985_v62 = vmul.f32 %v2753_v20, %v4338_v35  ;;  %v4346_v35 = vld [vmem:[#allocation43_spill] sm:$0xff] }
 0x3ba   :  { %2776 = vpow2.f32 %v1066_v6  ;;  %v2757_v50 = vpop.eup %2756  ;;  %v980_v48 = vmul.f32 %v2755_v37, %v4339_v42  ;;  %2010 = vrot.lane.b32.xlu0 %v1077_v8, %s2960_s14  ;;  %v1068_v3 = vmul.f32 %v2755_v37, %v2751_v59  ;;  %v1391_v38 = vpop.xlane.xlu0 %1390 }
 0x3bb   :  { %2778 = vpow2.f32 %v1478_v54  ;;  %v1376_v39 = vpop.xlane.xlu1 %1375  ;;  %1949 = vst.msk [vmem:[#allocation9 + $0x68] sm:$0xff] %vm74_vm0, %v985_v62  ;;  %v1486_v54 = vmul.f32 1.442695, %v1474_v15 }
 0x3bc   :  { %2780 = vrcp.f32 %v1376_v39  ;;  %1944 = vst.msk [vmem:[#allocation9 + $0x40] sm:$0xff] %vm74_vm0, %v980_v48  ;;  %v1076_v44 = vmul.f32 %v1068_v3, %v3023_v13 }
 0x3bd   :  { %v2759_v60 = vpop.eup %2758  ;;  %2782 = vrcp.f32 %v1391_v38  ;;  %v4347_v38 = vld [vmem:[#allocation36_spill] sm:$0xff] }
 0x3be   :  { %v2761_v9 = vpop.eup %2760  ;;  %2784 = vpow2.f32 %v1064_v57  ;;  %v983_v47 = vmul.f32 %v2759_v60, %v3792_v24  ;;  %v1071_v56 = vmul.f32 %v2759_v60, %v2749_v36  ;;  %2008 = vrot.lane.b32.xlu0 %v1076_v44, %s2960_s14  ;;  %v1397_v1 = vpop.xlane.xlu0 %1396  ;;  %v1477_v36 = vsub.f32 %v3953_v27, %v4343_v46  ;;  %v4348_v60 = vld [vmem:[#allocation21_spill] sm:$0xff] }
 0x3bf   :  { %v2763_v2 = vpop.eup %2762  ;;  %2786 = vpow2.f32 %v1484_v5  ;;  %v984_v61 = vmul.f32 %v2761_v9, %v4341_v43  ;;  %v1385_v58 = vpop.xlane.xlu1 %1384  ;;  %v1898_v44 = vsub.f32 %v4348_v60, %v4347_v38  ;;  %v4351_v43 = vld [vmem:[#allocation42_spill] sm:$0xff] }
 0x3c0   :  { %v2765_v4 = vpop.eup %2764  ;;  %1947 = vst.msk [vmem:[#allocation9 + $0x58] sm:$0xff] %vm74_vm0, %v983_v47  ;;  %2788 = vrcp.f32 %v1385_v58  ;;  %v1079_v0 = vmul.f32 %v3027_v14, %v1071_v56  ;;  %v1073_v24 = vmul.f32 %v2763_v2, %v2753_v20  ;;  %v1492_v29 = vmul.f32 1.442695, %v1477_v36  ;;  %v4350_v2 = vld [vmem:[#allocation44_spill] sm:$0xff]  ;;  %v4354_v36 = vld [vmem:[#allocation46_spill] sm:$0xff] }
 0x3c1   :  { %v2767_v32 = vpop.eup %2766  ;;  %1948 = vst.msk [vmem:[#allocation9 + $0x60] sm:$0xff] %vm74_vm0, %v984_v61  ;;  %2790 = vrcp.f32 %v1397_v1  ;;  %v1072_v27 = vmul.f32 %v2765_v4, %v2761_v9  ;;  %v4349_v47 = vsub.f32 %v3882_v31, %v3808_v52  ;;  %v4352_v61 = vld [vmem:[#allocation23_spill] sm:$0xff]  ;;  %v4353_v4 = vld [vmem:[#allocation45_spill] sm:$0xff]  ;;  %v1908_v46 = vmul.f32 1.442695, %v1898_v44  ;;  %v4361_v38 = vld [vmem:[#allocation34_spill] sm:$0xff] }
 0x3c2   :  { %v2769_v6 = vpop.eup %2768  ;;  %v982_v34 = vmul.f32 %v2767_v32, %v4344_v7  ;;  %2014 = vrot.lane.b32.xlu1 %v1079_v0, %s2960_s14  ;;  %v1070_v11 = vmul.f32 %v2767_v32, %v2757_v50  ;;  %2792 = vpow2.f32 %v1482_v16  ;;  %v1394_v8 = vpop.xlane.xlu0 %1393  ;;  %v1081_v51 = vmul.f32 %v4330_v17, %v1073_v24  ;;  %v4362_v60 = vld [vmem:[#allocation62_spill] sm:$0xff] }
 0x3c3   :  { %v987_v41 = vmul.f32 %v2769_v6, %v3816_v10  ;;  %v1382_v59 = vpop.xlane.xlu1 %1381  ;;  %v2771_v25 = vpop.eup %2770  ;;  %v1080_v42 = vmul.f32 %v1072_v27, %v4331_v45  ;;  %v1490_v56 = vmul.f32 1.442695, %v4349_v47  ;;  %v1899_v58 = vsub.f32 %v4352_v61, %v4351_v43  ;;  %v4363_v47 = vld [vmem:[#allocation50_spill] sm:$0xff] }
 0x3c4   :  { %1946 = vst.msk [vmem:[#allocation9 + $0x50] sm:$0xff] %vm74_vm0, %v982_v34  ;;  %2794 = vrcp.f32 %v1382_v59  ;;  %v1078_v21 = vmul.f32 %v1070_v11, %v4327_v22  ;;  %v4355_v11 = vld [vmem:[#allocation47_spill] sm:$0xff]  ;;  %v1896_v44 = vsub.f32 %v4362_v60, %v4361_v38 }
 0x3c5   :  { %v2773_v20 = vpop.eup %2772  ;;  %1951 = vst.msk [vmem:[#allocation9 + $0x78] sm:$0xff] %vm74_vm0, %v987_v41  ;;  %2796 = vrcp.f32 %v1394_v8  ;;  %v1910_v34 = vmul.f32 1.442695, %v1899_v58  ;;  %v4377_v60 = vld [vmem:[#allocation59_spill] sm:$0xff] }
 0x3c6   :  { %v2775_v37 = vpop.eup %2774  ;;  %2798 = vpow2.f32 %v1488_v55  ;;  %v1415_v10 = vmul.f32 %v2773_v20, %v4345_v19  ;;  %2018 = vrot.lane.b32.xlu1 %v1081_v51, %s2960_s14  ;;  %2012 = vrot.lane.b32.xlu0 %v1078_v21, %s2960_s14  ;;  %v1495_v53 = vmul.f32 %v2773_v20, %v2771_v25 }
 0x3c7   :  { %v2777_v57 = vpop.eup %2776  ;;  %2800 = vpow2.f32 %v1486_v54  ;;  %v986_v62 = vmul.f32 %v2775_v37, %v4346_v35  ;;  %v1388_v50 = vpop.xlane.xlu1 %1387 }
 0x3c8   :  { %v2779_v5 = vpop.eup %2778  ;;  %1953 = vst.msk [vmem:[#allocation9 + $0x88] sm:$0xff] %vm74_vm0, %v1415_v10  ;;  %2802 = vrcp.f32 %v1388_v50  ;;  %v1503_v48 = vmul.f32 %v3019_v12, %v1495_v53  ;;  %v1075_v39 = vmul.f32 %v2777_v57, %v2769_v6  ;;  %v4357_v10 = vld [vmem:[#allocation49_spill] sm:$0xff] }
 0x3c9   :  { %v2781_v3 = vpop.eup %2780  ;;  %1950 = vst.msk [vmem:[#allocation9 + $0x70] sm:$0xff] %vm74_vm0, %v986_v62  ;;  %2804 = vpow2.f32 %v1492_v29  ;;  %v4356_v29 = vsub.f32 %v3916_v23, %v3838_v26  ;;  %v4358_v26 = vld [vmem:[#allocation52_spill] sm:$0xff]  ;;  %v4359_v23 = vld [vmem:[#allocation39_spill] sm:$0xff] }
 0x3ca   :  { %v2783_v9 = vpop.eup %2782  ;;  %v1414_v16 = vmul.f32 %v2781_v3, %v4350_v2  ;;  %2016 = vrot.lane.b32.xlu1 %v1080_v42, %s2960_s14  ;;  %2042 = vrot.lane.b32.xlu0 %v1503_v48, %s2960_s14  ;;  %v1494_v18 = vmul.f32 %v2781_v3, %v2779_v5  ;;  %v1817_v0 = vpop.xlane.xlu0 %1816  ;;  %v1083_v31 = vmul.f32 %v4329_v40, %v1075_v39  ;;  %v2125_v48 = vld [vmem:[#allocation7 + $0x18] sm:$0xff] }
 0x3cb   :  { %v2785_v15 = vpop.eup %2784  ;;  %v1419_v1 = vmul.f32 %v2783_v9, %v4353_v4  ;;  %v1805_v24 = vpop.xlane.xlu1 %1804  ;;  %2806 = vrcp.f32 %v1817_v0  ;;  %v1914_v19 = vmul.f32 1.442695, %v4356_v29  ;;  %v4360_v39 = vsub.f32 %v4358_v26, %v4359_v23  ;;  %2625 = vmatprep.subr.mxu1 %v2125_v48  ;;  %2605 = vmatprep.subr.mxu0 %v2125_v48 }
 0x3cc   :  { %v2787_v32 = vpop.eup %2786  ;;  %1952 = vst.msk [vmem:[#allocation9 + $0x80] sm:$0xff] %vm74_vm0, %v1414_v16  ;;  %v1502_v52 = vmul.f32 %v1494_v18, %v3023_v13  ;;  %v1074_v6 = vmul.f32 %v2785_v15, %v2775_v37  ;;  %2808 = vrcp.f32 %v1805_v24  ;;  %v4364_v16 = vld [vmem:[#allocation54_spill] sm:$0xff]  ;;  %v4365_v18 = vld [vmem:[#allocation48_spill] sm:$0xff]  ;;  %2629 = vmatpush3.msra.mxu1 %v2125_v48  ;;  %2606 = vmatpush3.msra.mxu0 %v2125_v48 }
 0x3cd   :  { %v2789_v30 = vpop.eup %2788  ;;  %1957 = vst.msk [vmem:[#allocation9 + $0xa8] sm:$0xff] %vm74_vm0, %v1419_v1  ;;  %2810 = vpow2.f32 %v1490_v56  ;;  %v1912_v3 = vmul.f32 1.442695, %v4360_v39  ;;  %v4366_v15 = vsub.f32 %v4364_v16, %v4365_v18  ;;  %v4376_v39 = vld [vmem:[#allocation60_spill] sm:$0xff]  ;;  %v4378_v18 = vld [vmem:[#allocation61_spill] sm:$0xff] }
 0x3ce   :  { %v2791_v55 = vpop.eup %2790  ;;  %v1417_v7 = vmul.f32 %v2789_v30, %v4354_v36  ;;  %2022 = vrot.lane.b32.xlu1 %v1083_v31, %s2960_s14  ;;  %2040 = vrot.lane.b32.xlu0 %v1502_v52, %s2960_s14  ;;  %v1082_v25 = vmul.f32 %v1074_v6, %v4332_v63  ;;  %v1497_v8 = vmul.f32 %v2789_v30, %v2787_v32  ;;  %v1904_v31 = vmul.f32 1.442695, %v1896_v44  ;;  %v4367_v52 = vld [vmem:[#allocation53_spill] sm:$0xff] }
 0x3cf   :  { %v1421_v54 = vmul.f32 %v2791_v55, %v4355_v11  ;;  %v1802_v41 = vpop.xlane.xlu1 %1801  ;;  %v2793_v59 = vpop.eup %2792  ;;  %v1916_v43 = vmul.f32 1.442695, %v4366_v15  ;;  %v2124_v30 = vld [vmem:[#allocation7 + $0x10] sm:$0xff] }
 0x3d0   :  { %1955 = vst.msk [vmem:[#allocation9 + $0x98] sm:$0xff] %vm74_vm0, %v1417_v7  ;;  %2812 = vrcp.f32 %v1802_v41  ;;  %v1505_v50 = vmul.f32 %v3027_v14, %v1497_v8  ;;  %2626 = vmatprep.subr.mxu1 %v2124_v30  ;;  %2607 = vmatprep.subr.mxu0 %v2124_v30  ;;  %v2122_v8 = vld [vmem:[#allocation7] sm:$0xff] }
 0x3d1   :  { %v2795_v51 = vpop.eup %2794  ;;  %1959 = vst.msk [vmem:[#allocation9 + $0xb8] sm:$0xff] %vm74_vm0, %v1421_v54  ;;  %2814 = vpow2.f32 %v1908_v46  ;;  %v2123_v46 = vld [vmem:[#allocation7 + $0x8] sm:$0xff]  ;;  %2630 = vmatpush3.msra.mxu1 %v2124_v30  ;;  %2608 = vmatpush3.msra.mxu0 %v2124_v30 }
 0x3d2   :  { %v2797_v21 = vpop.eup %2796  ;;  %v1416_v27 = vmul.f32 %v2795_v51, %v3858_v28  ;;  %2020 = vrot.lane.b32.xlu1 %v1082_v25, %s2960_s14  ;;  %v1496_v20 = vmul.f32 %v2795_v51, %v2793_v59  ;;  %2816 = vpow2.f32 %v1910_v34  ;;  %v1820_v57 = vpop.xlane.xlu0 %1819  ;;  %v4369_v34 = vld [vmem:[#allocation51_spill] sm:$0xff]  ;;  %2627 = vmatprep.subr.mxu1 %v2123_v46 }
 0x3d3   :  { %v2799_v37 = vpop.eup %2798  ;;  %v1420_v53 = vmul.f32 %v2797_v21, %v4357_v10  ;;  %v1811_v35 = vpop.xlane.xlu1 %1810  ;;  %2818 = vrcp.f32 %v1820_v57  ;;  %2609 = vmatprep.subr.mxu0 %v2123_v46  ;;  %2631 = vmatpush3.msra.mxu1 %v2123_v46  ;;  %v4374_v57 = vld [vmem:[#allocation58_spill] sm:$0xff] }
 0x3d4   :  { %v2801_v62 = vpop.eup %2800  ;;  %1954 = vst.msk [vmem:[#allocation9 + $0x90] sm:$0xff] %vm74_vm0, %v1416_v27  ;;  %v1504_v28 = vmul.f32 %v1496_v20, %v4327_v22  ;;  %v1499_v5 = vmul.f32 %v2799_v37, %v2783_v9  ;;  %2820 = vrcp.f32 %v1811_v35  ;;  %v4371_v27 = vld [vmem:[#allocation56_spill] sm:$0xff]  ;;  %v4372_v20 = vld [vmem:[#allocation31_spill] sm:$0xff]  ;;  %2628 = vmatprep.subr.mxu1 %v2122_v8  ;;  %2610 = vmatpush3.msra.mxu0 %v2123_v46 }
 0x3d5   :  { %v2803_v42 = vpop.eup %2802  ;;  %1958 = vst.msk [vmem:[#allocation9 + $0xb0] sm:$0xff] %vm74_vm0, %v1420_v53  ;;  %2822 = vpow2.f32 %v1914_v19  ;;  %v4373_v37 = vsub.f32 %v4371_v27, %v4372_v20  ;;  %2632 = vmatpush3.msra.mxu1 %v2122_v8  ;;  %2611 = vmatprep.subr.mxu0 %v2122_v8 }
 0x3d6   :  { %v1418_v56 = vmul.f32 %v2803_v42, %v4363_v47  ;;  %2046 = vrot.lane.b32.xlu1 %v1505_v50, %s2960_s14  ;;  %2044 = vrot.lane.b32.xlu0 %v1504_v28, %s2960_s14  ;;  %v1498_v2 = vmul.f32 %v2803_v42, %v2801_v62  ;;  %v2805_v9 = vpop.eup %2804  ;;  %v1823_v61 = vpop.xlane.xlu0 %1822  ;;  %v1507_v4 = vmul.f32 %v4330_v17, %v1499_v5  ;;  %v4375_v62 = vld [vmem:[#allocation57_spill] sm:$0xff] }
 0x3d7   :  { %v1808_v58 = vpop.xlane.xlu1 %1807  ;;  %2824 = vrcp.f32 %v1823_v61  ;;  %v1501_v0 = vmul.f32 %v2805_v9, %v2791_v55  ;;  %v4368_v55 = vsub.f32 %v3957_v33, %v3856_v49  ;;  %v4370_v49 = vld [vmem:[#allocation55_spill] sm:$0xff]  ;;  %v1906_v29 = vmul.f32 1.442695, %v4373_v37  ;;  %2612 = vmatpush3.msra.mxu0 %v2122_v8 }
 0x3d8   :  { %1956 = vst.msk [vmem:[#allocation9 + $0xa0] sm:$0xff] %vm74_vm0, %v1418_v56  ;;  %v1506_v1 = vmul.f32 %v1498_v2, %v4331_v45  ;;  %v2807_v24 = vpop.eup %2806  ;;  %2826 = vrcp.f32 %v1808_v58 }
 0x3d9   :  { %v4113_v32 = vpop.eup %2808  ;;  %2828 = vpow2.f32 %v1912_v3  ;;  %v1845_v6 = vmul.f32 %v2807_v24, %v4367_v52  ;;  %v1918_v7 = vmul.f32 1.442695, %v4368_v55  ;;  %v1509_v41 = vmul.f32 %v4329_v40, %v1501_v0 }
 0x3da   :  { %2050 = vrot.lane.b32.xlu1 %v1507_v4, %s2960_s14  ;;  %2048 = vrot.lane.b32.xlu0 %v1506_v1, %s2960_s14  ;;  %v2811_v36 = vpop.eup %2810  ;;  %2830 = vpow2.f32 %v1916_v43  ;;  %v1841_v11 = vmul.f32 %v4113_v32, %v4369_v34  ;;  %v1979_v30 = vpop.permute.xlu0 %1978 }
 0x3db   :  { %v1814_v54 = vpop.xlane.xlu1 %1813  ;;  %1965 = vst.msk [vmem:[#allocation9 + $0xe8] sm:$0xff] %vm74_vm0, %v1845_v6  ;;  %v1500_v59 = vmul.f32 %v2811_v36, %v2797_v21 }
 0x3dc   :  { %2832 = vrcp.f32 %v1814_v54  ;;  %1961 = vst.msk [vmem:[#allocation9 + $0xc8] sm:$0xff] %vm74_vm0, %v1841_v11 }
 0x3dd   :  { %v2813_v25 = vpop.eup %2812  ;;  %2834 = vpow2.f32 %v1904_v31  ;;  %v1508_v19 = vmul.f32 %v1500_v59, %v4332_v63 }
 0x3de   :  { %v1840_v33 = vmul.f32 %v2813_v25, %v4370_v49  ;;  %2054 = vrot.lane.b32.xlu1 %v1509_v41, %s2960_s14  ;;  %v2815_v51 = vpop.eup %2814  ;;  %2836 = vpow2.f32 %v1918_v7 }
 0x3df   :  { %v2817_v21 = vpop.eup %2816  ;;  %2838 = vpow2.f32 %v1906_v29 }
 0x3e0   :  { %1960 = vst.msk [vmem:[#allocation9 + $0xc0] sm:$0xff] %vm74_vm0, %v1840_v33  ;;  %v2819_v10 = vpop.eup %2818 }
 0x3e1   :  { %v2821_v53 = vpop.eup %2820  ;;  %v1846_v35 = vmul.f32 %v2819_v10, %v4374_v57 }
 0x3e2   :  { %2052 = vrot.lane.b32.xlu1 %v1508_v19, %s2960_s14  ;;  %v1843_v50 = vmul.f32 %v2821_v53, %v4375_v62  ;;  %v1923_v28 = vmul.f32 %v2821_v53, %v2817_v21  ;;  %v2823_v5 = vpop.eup %2822 }
 0x3e3   :  { %1966 = vst.msk [vmem:[#allocation9 + $0xf0] sm:$0xff] %vm74_vm0, %v1846_v35  ;;  %v1925_v26 = vmul.f32 %v2823_v5, %v2807_v24 }
 0x3e4   :  { %v2825_v42 = vpop.eup %2824  ;;  %1963 = vst.msk [vmem:[#allocation9 + $0xd8] sm:$0xff] %vm74_vm0, %v1843_v50  ;;  %v1931_v48 = vmul.f32 %v3027_v14, %v1923_v28 }
 0x3e5   :  { %v2827_v23 = vpop.eup %2826  ;;  %v1847_v3 = vmul.f32 %v2825_v42, %v4376_v39  ;;  %v1933_v9 = vmul.f32 %v4330_v17, %v1925_v26 }
 0x3e6   :  { %v2829_v38 = vpop.eup %2828  ;;  %v1842_v44 = vmul.f32 %v2827_v23, %v4377_v60  ;;  %2078 = vrot.lane.b32.xlu1 %v1931_v48, %s2960_s14  ;;  %v1922_v47 = vmul.f32 %v2827_v23, %v2815_v51 }
 0x3e7   :  { %v2831_v56 = vpop.eup %2830  ;;  %1967 = vst.msk [vmem:[#allocation9 + $0xf8] sm:$0xff] %vm74_vm0, %v1847_v3 }
 0x3e8   :  { %1962 = vst.msk [vmem:[#allocation9 + $0xd0] sm:$0xff] %vm74_vm0, %v1842_v44  ;;  %v1930_v14 = vmul.f32 %v1922_v47, %v4327_v22  ;;  %v1926_v16 = vmul.f32 %v2831_v56, %v2819_v10 }
 0x3e9   :  { %v2833_v2 = vpop.eup %2832 }
 0x3ea   :  { %v1844_v15 = vmul.f32 %v2833_v2, %v4378_v18  ;;  %v1924_v43 = vmul.f32 %v2833_v2, %v2829_v38  ;;  %v2835_v61 = vpop.eup %2834  ;;  %2082 = vrot.lane.b32.xlu1 %v1933_v9, %s2960_s14  ;;  %2076 = vrot.lane.b32.xlu0 %v1930_v14, %s2960_s14  ;;  %v1934_v1 = vmul.f32 %v1926_v16, %v4332_v63 }
 0x3eb   :  { %v2837_v58 = vpop.eup %2836  ;;  %v1920_v17 = vmul.f32 %v2835_v61, %v2813_v25 }
 0x3ec   :  { %1964 = vst.msk [vmem:[#allocation9 + $0xe0] sm:$0xff] %vm74_vm0, %v1844_v15  ;;  %v1932_v4 = vmul.f32 %v1924_v43, %v4331_v45  ;;  %v1927_v0 = vmul.f32 %v2837_v58, %v2825_v42  ;;  %v2839_v22 = vpop.eup %2838 }
 0x3ed   :  { %v1928_v31 = vmul.f32 %v1920_v17, %v3023_v13  ;;  %v1921_v52 = vmul.f32 %v2839_v22, %v4113_v32 }
 0x3ee   :  { %2084 = vrot.lane.b32.xlu1 %v1934_v1, %s2960_s14  ;;  %2080 = vrot.lane.b32.xlu0 %v1932_v4, %s2960_s14  ;;  %v1935_v24 = vmul.f32 %v4329_v40, %v1927_v0 }
 0x3ef   :  { %v1929_v45 = vmul.f32 %v3019_v12, %v1921_v52 }
 0x3f2   :  { %2086 = vrot.lane.b32.xlu1 %v1935_v24, %s2960_s14  ;;  %2072 = vrot.lane.b32.xlu0 %v1928_v31, %s2960_s14 }
 0x3f6   :  { %2074 = vrot.lane.b32.xlu0 %v1929_v45, %s2960_s14 }
 0x417   :  { %v1977_v46 = vpop.permute.xlu0 %1976 }
 0x41b   :  { %v1983_v63 = vpop.permute.xlu1 %1982 }
 0x420   :  { %v1981_v6 = vpop.permute.xlu1 %1980 }
 0x424   :  { %v1991_v36 = vpop.permute.xlu1 %1990  ;;  %v1987_v55 = vpop.permute.xlu0 %1986 }
 0x428   :  { %v1989_v7 = vpop.permute.xlu1 %1988  ;;  %v1985_v40 = vpop.permute.xlu0 %1984 }
 0x42c   :  { %v2011_v11 = vpop.permute.xlu0 %2010 }
 0x42d   :  { %v2097_v43 = vsel %vm235_vm1, %v1979_v30, %v2011_v11 }
 0x430   :  { %v2009_v54 = vpop.permute.xlu0 %2008 }
 0x431   :  { %v2096_v44 = vsel %vm235_vm1, %v1977_v46, %v2009_v54 }
 0x434   :  { %v2015_v34 = vpop.permute.xlu1 %2014 }
 0x435   :  { %v2099_v19 = vsel %vm235_vm1, %v1983_v63, %v2015_v34 }
 0x438   :  { %v2019_v13 = vpop.permute.xlu1 %2018  ;;  %v2013_v59 = vpop.permute.xlu0 %2012 }
 0x439   :  { %v2098_v21 = vsel %vm235_vm1, %v1981_v6, %v2013_v59  ;;  %v2101_v5 = vsel %vm235_vm1, %v1987_v55, %v2019_v13 }
 0x43c   :  { %v2017_v32 = vpop.permute.xlu1 %2016  ;;  %v2043_v12 = vpop.permute.xlu0 %2042 }
 0x43d   :  { %v2100_v28 = vsel %vm235_vm1, %v1985_v40, %v2017_v32  ;;  %v2106_v61 = vsel %vm2104_vm6, %v2097_v43, %v2043_v12 }
 0x440   :  { %v2023_v41 = vpop.permute.xlu1 %2022  ;;  %v2041_v8 = vpop.permute.xlu0 %2040 }
 0x441   :  { %v2103_v47 = vsel %vm235_vm1, %v1991_v36, %v2023_v41  ;;  %v2105_v2 = vsel %vm2104_vm6, %v2096_v44, %v2041_v8 }
 0x444   :  { %v2021_v25 = vpop.permute.xlu1 %2020 }
 0x445   :  { %v2102_v23 = vsel %vm235_vm1, %v1989_v7, %v2021_v25 }
 0x448   :  { %v2047_v49 = vpop.permute.xlu1 %2046  ;;  %v2045_v27 = vpop.permute.xlu0 %2044 }
 0x449   :  { %v2107_v10 = vsel %vm2104_vm6, %v2098_v21, %v2045_v27  ;;  %v2108_v35 = vsel %vm2104_vm6, %v2099_v19, %v2047_v49 }
 0x44c   :  { %v2051_v33 = vpop.permute.xlu1 %2050  ;;  %v2049_v37 = vpop.permute.xlu0 %2048 }
 0x44d   :  { %v2109_v42 = vsel %vm2104_vm6, %v2100_v28, %v2049_v37  ;;  %v2110_v39 = vsel %vm2104_vm6, %v2101_v5, %v2051_v33 }
 0x450   :  { %v2055_v51 = vpop.permute.xlu1 %2054 }
 0x451   :  { %v2112_v9 = vsel %vm2104_vm6, %v2103_v47, %v2055_v51 }
 0x454   :  { %v2053_v20 = vpop.permute.xlu1 %2052 }
 0x455   :  { %v2111_v38 = vsel %vm2104_vm6, %v2102_v23, %v2053_v20 }
 0x458   :  { %v2079_v29 = vpop.permute.xlu1 %2078 }
 0x459   :  { %v2117_v50 = vsel %vm2113_vm7, %v2108_v35, %v2079_v29 }
 0x45c   :  { %v2077_v53 = vpop.permute.xlu0 %2076  ;;  %v2083_v57 = vpop.permute.xlu1 %2082 }
 0x45d   :  { %v2116_v62 = vsel %vm2113_vm7, %v2107_v10, %v2077_v53  ;;  %v2119_v60 = vsel %vm2113_vm7, %v2110_v39, %v2083_v57 }
 0x45e   :  { %2616 = vmatprep.mubr.msk.f32.mxu1 %vm74_vm0, %v2116_v62 }
 0x45f   :  { %2617 = vmatmul.mubr.msk.f32.vlgmr.msra.gmra.mxu1 %vm74_vm0, %v2117_v50 }
 0x460   :  { %v2081_v48 = vpop.permute.xlu0 %2080  ;;  %v2085_v26 = vpop.permute.xlu1 %2084 }
 0x461   :  { %v2118_v3 = vsel %vm2113_vm7, %v2109_v42, %v2081_v48  ;;  %v2120_v56 = vsel %vm2113_vm7, %v2111_v38, %v2085_v26 }
 0x462   :  { %2619 = vmatprep.mubr.msk.f32.mxu1 %vm74_vm0, %v2118_v3 }
 0x463   :  { %2620 = vmatmul.mubr.msk.f32.gmra.mxu1 %vm74_vm0, %v2119_v60 }
 0x464   :  { %v2073_v14 = vpop.permute.xlu0 %2072  ;;  %2622 = vmatprep.mubr.msk.f32.mxu1 %vm74_vm0, %v2120_v56  ;;  %v2087_v16 = vpop.permute.xlu1 %2086 }
 0x465   :  { %v2114_v18 = vsel %vm2113_vm7, %v2105_v2, %v2073_v14  ;;  %v2121_v15 = vsel %vm2113_vm7, %v2112_v9, %v2087_v16 }
 0x466   :  { %2613 = vmatprep.mubr.msk.f32.mxu0 %vm74_vm0, %v2114_v18 }
 0x467   :  { %2623 = vmatmul.mubr.msk.f32.gmra.mxu1 %vm74_vm0, %v2121_v15 }
 0x468   :  { %v2075_v58 = vpop.permute.xlu0 %2074 }
 0x469   :  { %v2115_v4 = vsel %vm2113_vm7, %v2106_v61, %v2075_v58 }
 0x46a   :  { %2614 = vmatmul.mubr.msk.f32.vlgmr.msra.gmra.mxu0 %vm74_vm0, %v2115_v4 }
 0x46b   :  { %2911 = shalt.err (!%p2908_p5)
}
 0x46c   :  { %2293 = dma.vmem_to_hbm [thread:$0]  %s2288_s16, 4096, %s4221_s5, [#allocation10], %s2950_s23, %s2950_s23, %s2951_s24  }
 0x46d   :  { %v2376_v1 = vld [vmem:[%s4219_s3] ss:$0 sm:$0xff]  ;;  %s2962_s3 = smov [#allocation8]  }
 0x46e   :  { %s2275_s5 = sshll.u32 %s2962_s3, 4  ;;  %s2276_s5 = int_to_ptr.vmem [resolvable:$true] %s2275_s5 }
 0x46f   :  { %s2920_s22 = scalar_lea.vmem %s2276_s5, 1024  ;;  %p2925_p7 = scmp.lt.s32.totalorder %s2276_s5, %s2276_s5 }
 0x470   :  { %p2921_p6 = scmp.ne.s32.totalorder %s2276_s5, %s2920_s22  ;;  %p2926_p8 = scmp.lt.s32.totalorder %s2920_s22, %s2920_s22 }
 0x472   :  { %p2927_p9 = por %p2926_p8, %p2925_p7 }
 0x474   :  { %p2928_p10 = pnand %p2927_p9, %p2921_p6 }
 0x51f   :  { %v2618_v0 = vpop.f32.mrf.mxu1 }
 0x520   :  { %v2239_v17 = vadd.f32 %v2618_v0, %v2376_v1 }
 0x521   :  { %v2233_v22 = vpop.f32.mrf.mxu1 }
 0x522   :  { %2265 = vst.msk [vmem:[#allocation8 + $0x18] sm:$0xff] %vm74_vm0, %v2239_v17  ;;  %v2234_v24 = vadd.f32 %v2376_v1, %v2233_v22 }
 0x523   :  { %v2621_v31 = vpop.f32.mrf.mxu1 }
 0x524   :  { %2264 = vst.msk [vmem:[#allocation8 + $0x10] sm:$0xff] %vm74_vm0, %v2234_v24  ;;  %v2249_v52 = vadd.f32 %v2621_v31, %v2376_v1 }
 0x525   :  { %v2243_v45 = vpop.f32.mrf.mxu1 }
 0x526   :  { %2267 = vst.msk [vmem:[#allocation8 + $0x28] sm:$0xff] %vm74_vm0, %v2249_v52  ;;  %v2244_v63 = vadd.f32 %v2376_v1, %v2243_v45 }
 0x527   :  { %v2624_v6 = vpop.f32.mrf.mxu1 }
 0x528   :  { %2266 = vst.msk [vmem:[#allocation8 + $0x20] sm:$0xff] %vm74_vm0, %v2244_v63  ;;  %v2259_v30 = vadd.f32 %v2624_v6, %v2376_v1 }
 0x529   :  { %v2253_v46 = vpop.f32.mrf.mxu1 }
 0x52a   :  { %2269 = vst.msk [vmem:[#allocation8 + $0x38] sm:$0xff] %vm74_vm0, %v2259_v30  ;;  %v2254_v36 = vadd.f32 %v2376_v1, %v2253_v46  ;;  %v2615_v55 = vpop.f32.mrf.mxu0 }
 0x52b   :  { %v2229_v7 = vadd.f32 %v2615_v55, %v2376_v1 }
 0x52c   :  { %2268 = vst.msk [vmem:[#allocation8 + $0x30] sm:$0xff] %vm74_vm0, %v2254_v36  ;;  %v2223_v40 = vpop.f32.mrf.mxu0 }
 0x52d   :  { %2263 = vst.msk [vmem:[#allocation8 + $0x8] sm:$0xff] %vm74_vm0, %v2229_v7  ;;  %v2224_v34 = vadd.f32 %v2376_v1, %v2223_v40 }
 0x52f   :  { %2262 = vst.msk [vmem:[#allocation8] sm:$0xff] %vm74_vm0, %v2224_v34 }
 0x530   :  { %2931 = shalt.err (!%p2928_p10)
}
 0x531   :  { %2281 = dma.vmem_to_hbm [thread:$0]  %s2276_s5, 1024, %s4220_s4, [#allocation4], %s2950_s23, %s2950_s23, %s2951_s24  }
 0x532   :  { %2944 = dma.done.wait [#allocation4], 1024  }
 0x533   :  { %2945 = vsyncadd [#allocation4], 4294966272 }
 0x534   :  { %2946 = dma.done.wait [#allocation10], 4096  }
 0x535   :  { %2947 = vsyncadd [#allocation10], 4294963200 }
 0x536   :  { %2300 = vsyncpa [#allocation3], 1 }
 0x537   :  { %2301 = vsyncpa [#allocation6], 1 }
 0x538   :  { %2302 = vsyncpa [#allocation4], 1 }
 0x539   :  { %2303 = vsyncpa [#allocation10], 1 }

</bundles_post_ra>
